<compile_context>
chip_gen: v7x
topology: tpu7x:2x2x1
jax: 0.10.0
libtpu: 0.0.40
codegen_flags: <defaults>
</compile_context>

<pallas_src>
import functools

import jax
import jax.numpy as jnp
import numpy as np
from jax import lax
from jax.experimental import pallas as pl
from jax.experimental.pallas import tpu as pltpu


# ----- f32 slab row layout (rows of a (24, 128) float32 slab) -----
ROW_BIAS, ROW_H0, ROW_C0, ROW_BTAG = 0, 1, 2, 3
ROW_TRANS, ROW_TRANST, ROWS_F32 = 8, 16, 24


# ----------------------------- fused kernel -----------------------------
def bilstm_crf_kernel(sent_ref, wb_ref, wf_ref,
                      score_ref, path_ref, feats_ref=None,
                      *, S, E, H, V, T, start_idx, stop_idx):
    H2, H8 = 2 * H, 8 * H
    NEG = jnp.float32(-10000.0)
    b = pl.program_id(0)

    # bf16 slab row offsets (static)
    WIH_ROW, WHH_ROW, WTAG_ROW, TBL_ROW = 0, E, E + H2, E + 2 * H2

    # ---------------- embedding lookup (one-hot MXU gather, ids from SMEM) ----------------
    row_iota_S1 = lax.broadcasted_iota(jnp.int32, (S, 1), 0)
    tok_col = jnp.zeros((S, 1), jnp.int32)
    for t in range(S):
        tok_col = jnp.where(row_iota_S1 == t, sent_ref[b, t], tok_col)
    vocab_iota = lax.broadcasted_iota(jnp.int32, (S, V), 1)
    onehot = (vocab_iota == tok_col).astype(jnp.bfloat16)                   # (S, V)
    tbl = wb_ref[TBL_ROW:TBL_ROW + V, 0:E]                                  # (V, E) bf16
    emb = jnp.dot(onehot, tbl, preferred_element_type=jnp.float32)          # (S, E) f32

    # ---------------- BiLSTM ----------------
    wih = wb_ref[WIH_ROW:WIH_ROW + E, :]                                    # (E, 8H)  bf16
    whh = wb_ref[WHH_ROW:WHH_ROW + H2, :]                                   # (2H, 8H) bf16 (block structured)
    bias = wf_ref[ROW_BIAS:ROW_BIAS + 1, :]                                 # (1, 8H)  f32

    # hoisted input projection (both directions, all gates): one lane-dense matmul
    xproj = jnp.dot(emb.astype(jnp.bfloat16), wih,
                    preferred_element_type=jnp.float32) + bias              # (S, 8H) f32

    h = wf_ref[ROW_H0:ROW_H0 + 1, 0:H2]                                     # (1, 2H) = [hf | hb]
    c = wf_ref[ROW_C0:ROW_C0 + 1, 0:H2]

    lane8 = lax.broadcasted_iota(jnp.int32, (1, H8), 1)
    fwd_gate_lanes = (lane8 % H2) < H            # fwd columns inside each gate-major group
    row_SH = lax.broadcasted_iota(jnp.int32, (S, H2), 0)
    col_SH = lax.broadcasted_iota(jnp.int32, (S, H2), 1)
    fwd_cols = col_SH < H

    hid = jnp.zeros((S, H2), jnp.float32)
    for k in range(S):                           # static unroll; fwd/bwd in ONE serial chain
        tf, tb = k, S - 1 - k
        xg = jnp.where(fwd_gate_lanes, xproj[tf:tf + 1, :], xproj[tb:tb + 1, :])
        g = xg + jnp.dot(h.astype(jnp.bfloat16), whh,
                         preferred_element_type=jnp.float32)                # (1, 8H)
        sg = jax.nn.sigmoid(g)                   # one EUP pass over all 8 gates
        tg = jnp.tanh(g)
        i_g = sg[:, 0:H2]
        f_g = sg[:, H2:2 * H2]
        g_g = tg[:, 2 * H2:3 * H2]
        o_g = sg[:, 3 * H2:4 * H2]
        c = f_g * c + i_g * g_g                  # (1, 2H) f32
        h = o_g * jnp.tanh(c)
        h_bc = jnp.broadcast_to(h, (S, H2))
        hid = jnp.where((row_SH == tf) & fwd_cols, h_bc, hid)      # fwd half at time tf
        hid = jnp.where((row_SH == tb) & (~fwd_cols), h_bc, hid)   # bwd half at time tb

    # hidden2tag
    wtag = wb_ref[WTAG_ROW:WTAG_ROW + H2, 0:T]                              # (2H, T) bf16
    btag = wf_ref[ROW_BTAG:ROW_BTAG + 1, 0:T]
    feats = jnp.dot(hid.astype(jnp.bfloat16), wtag,
                    preferred_element_type=jnp.float32) + btag              # (S, T) f32
    if feats_ref is not None:
        feats_ref[...] = feats

    # ---------------- Viterbi decode (alternating row/column orientation) ----------------
    trans = wf_ref[ROW_TRANS:ROW_TRANS + T, 0:T]      # trans[next, prev]
    transT = wf_ref[ROW_TRANST:ROW_TRANST + T, 0:T]   # transT[prev, next]

    sub_iota = lax.broadcasted_iota(jnp.int32, (T, T), 0)
    lan_iota = lax.broadcasted_iota(jnp.int32, (T, T), 1)
    diag = sub_iota == lan_iota
    sub_T = lax.broadcasted_iota(jnp.int32, (T, 1), 0)
    lane_T = lax.broadcasted_iota(jnp.int32, (1, T), 1)
    lane_S = lax.broadcasted_iota(jnp.int32, (1, S), 1)

    # feats columns for odd steps, pre-reoriented OFF the serial decode chain
    feats_col = {}
    for t in range(1, S, 2):
        feats_col[t] = jnp.sum(
            jnp.where(diag, jnp.broadcast_to(feats[t:t + 1, :], (T, T)), jnp.float32(0.0)),
            axis=1, keepdims=True)                                          # (T, 1)

    fv = jnp.where(sub_T == start_idx, jnp.float32(0.0), NEG)               # (T,1) column over prev
    bp_list = []
    for t in range(S):                           # static unroll
        if t % 2 == 0:
            v = transT + fv                      # v[prev, next]
            m = jnp.max(v, axis=0, keepdims=True)                           # (1,T) over next
            bp = jnp.min(jnp.where(v == m, sub_iota, T),
                         axis=0, keepdims=True).astype(jnp.int32)           # first argmax
            fv = m + feats[t:t + 1, :]           # row over next
        else:
            v = trans + fv                       # v[next, prev]
            m = jnp.max(v, axis=1, keepdims=True)                           # (T,1) over next
            bp = jnp.min(jnp.where(v == m, lan_iota, T),
                         axis=1, keepdims=True).astype(jnp.int32)
            fv = m + feats_col[t]                # column over next
        bp_list.append(bp)

    if (S - 1) % 2 == 1:                         # last step produced a column
        term = fv + transT[:, stop_idx:stop_idx + 1]
        score = jnp.max(term)
        best = jnp.min(jnp.where(term == score, sub_T, T)).astype(jnp.int32)
    else:                                        # last step produced a row
        term = fv + trans[stop_idx:stop_idx + 1, :]
        score = jnp.max(term)
        best = jnp.min(jnp.where(term == score, lane_T, T)).astype(jnp.int32)

    # backtrack on register-held backpointers
    # TODO(synk): PyTorch asserts the final popped backpointer equals START_TAG; no kernel-side assert.
    path = jnp.where(lane_S == S - 1, best, 0).astype(jnp.int32)
    cur = best
    for t in range(S - 1, 0, -1):
        bp = bp_list[t]
        if t % 2 == 0:
            prev = jnp.sum(jnp.where(lane_T == cur, bp, 0)).astype(jnp.int32)
        else:
            prev = jnp.sum(jnp.where(sub_T == cur, bp, 0)).astype(jnp.int32)
        path = jnp.where(lane_S == (t - 1), prev, path)
        cur = prev

    score_ref[...] = jnp.reshape(score, (1, 1))
    path_ref[...] = path


# ----------------------------- host-side packing + wrapper -----------------------------
def pack_params(embed_tbl, params, trans, E, H, V, T):
    H2, H8 = 2 * H, 8 * H
    wih = jnp.zeros((E, H8), jnp.float32)
    whh = jnp.zeros((H2, H8), jnp.float32)
    bias = jnp.zeros((1, H8), jnp.float32)
    # gate-major columns: [i_f i_b | f_f f_b | g_f g_b | o_f o_b], each sub-block H lanes
    for g in range(4):
        base = g * H2
        wih = wih.at[:, base:base + H].set(params["wih_f"][g])
        wih = wih.at[:, base + H:base + H2].set(params["wih_b"][g])
        whh = whh.at[0:H, base:base + H].set(params["whh_f"][g])           # hf feeds fwd columns
        whh = whh.at[H:H2, base + H:base + H2].set(params["whh_b"][g])     # hb feeds bwd columns
        bias = bias.at[0, base:base + H].set(params["b_f"][g])
        bias = bias.at[0, base + H:base + H2].set(params["b_b"][g])

    # bf16 slab: [wih | whh | wtag | embedding table], lane-dense (rows x 128)
    tbl_row = E + 2 * H2
    rows_b = ((tbl_row + V + 15) // 16) * 16
    wb = jnp.zeros((rows_b, H8), jnp.float32)
    wb = wb.at[0:E, :].set(wih)
    wb = wb.at[E:E + H2, :].set(whh)
    wb = wb.at[E + H2:E + 2 * H2, 0:T].set(params["wtag"])
    wb = wb.at[tbl_row:tbl_row + V, 0:E].set(embed_tbl)
    wb = wb.astype(jnp.bfloat16)

    # f32 slab: bias / initial state / btag / CRF tables
    wf = jnp.zeros((ROWS_F32, H8), jnp.float32)
    wf = wf.at[ROW_BIAS, :].set(bias[0])
    wf = wf.at[ROW_H0, 0:H].set(params["h0"][0])
    wf = wf.at[ROW_H0, H:H2].set(params["h0"][1])
    wf = wf.at[ROW_C0, 0:H].set(params["c0"][0])
    wf = wf.at[ROW_C0, H:H2].set(params["c0"][1])
    wf = wf.at[ROW_BTAG, 0:T].set(params["btag"][0])
    wf = wf.at[ROW_TRANS:ROW_TRANS + T, 0:T].set(trans)
    wf = wf.at[ROW_TRANST:ROW_TRANST + T, 0:T].set(trans.T)
    return wb, wf


def bilstm_crf_forward(sentences, embed_tbl, params, trans, start_idx, stop_idx,
                       export_feats=True):
    B, S = sentences.shape
    V, E = embed_tbl.shape
    H = params["whh_f"].shape[1]
    T = trans.shape[0]
    wb, wf = pack_params(embed_tbl, params, trans, E, H, V, T)

    kernel = functools.partial(bilstm_crf_kernel, S=S, E=E, H=H, V=V, T=T,
                               start_idx=start_idx, stop_idx=stop_idx)

    out_shape = [jax.ShapeDtypeStruct((B, 1, 1), jnp.float32),
                 jax.ShapeDtypeStruct((B, 1, S), jnp.int32)]
    out_specs = [pl.BlockSpec((None, 1, 1), lambda b, sent: (b, 0, 0)),
                 pl.BlockSpec((None, 1, S), lambda b, sent: (b, 0, 0))]
    if export_feats:
        out_shape.append(jax.ShapeDtypeStruct((B, S, T), jnp.float32))
        out_specs.append(pl.BlockSpec((None, S, T), lambda b, sent: (b, 0, 0)))

    outs = pl.pallas_call(
        kernel,
        out_shape=tuple(out_shape),
        grid_spec=pltpu.PrefetchScalarGridSpec(
            num_scalar_prefetch=1,                                   # token ids -> SMEM
            grid=(B,),
            in_specs=[
                pl.BlockSpec(wb.shape, lambda b, sent: (0, 0)),      # bf16 slab, VMEM-resident
                pl.BlockSpec(wf.shape, lambda b, sent: (0, 0)),      # f32 slab, VMEM-resident
            ],
            out_specs=tuple(out_specs),
        ),
        compiler_params=pltpu.CompilerParams(dimension_semantics=("parallel",)),
    )(sentences.astype(jnp.int32), wb, wf)

    score = outs[0][:, 0, 0]
    path = outs[1][:, 0, :]
    if export_feats:
        return score, path, outs[2]
    return score, path


# ----------------------------- main -----------------------------
if __name__ == "__main__":
    START_TAG, STOP_TAG = "<START>", "<STOP>"
    tag_to_ix = {"B": 0, "I": 1, "O": 2, START_TAG: 3, STOP_TAG: 4}
    vocab_size, embedding_dim, hidden_dim = 20, 16, 32
    T = len(tag_to_ix)
    H = hidden_dim // 2
    B, S = 4, 8

    key = jax.random.PRNGKey(0)
    ks = jax.random.split(key, 16)

    def rnd(k, shape, scale=0.1):
        return (scale * jax.random.normal(k, shape)).astype(jnp.float32)

    embed_tbl = rnd(ks[0], (vocab_size, embedding_dim), 1.0)
    params = dict(
        wih_f=rnd(ks[1], (4, embedding_dim, H)),
        whh_f=rnd(ks[2], (4, H, H)),
        b_f=rnd(ks[3], (4, H)),
        wih_b=rnd(ks[4], (4, embedding_dim, H)),
        whh_b=rnd(ks[5], (4, H, H)),
        b_b=rnd(ks[6], (4, H)),
        h0=rnd(ks[7], (2, H), 1.0),
        c0=rnd(ks[8], (2, H), 1.0),
        wtag=rnd(ks[9], (2 * H, T), 1.0),
        btag=rnd(ks[10], (1, T), 1.0),
    )
    trans = jax.random.normal(ks[11], (T, T)).astype(jnp.float32)
    trans = trans.at[tag_to_ix[START_TAG], :].set(-10000.0)
    trans = trans.at[:, tag_to_ix[STOP_TAG]].set(-10000.0)

    sentences = jax.random.randint(ks[12], (B, S), 0, vocab_size)

    score, path, feats = bilstm_crf_forward(sentences, embed_tbl, params, trans,
                                            tag_to_ix[START_TAG], tag_to_ix[STOP_TAG],
                                            export_feats=True)
    score, path, feats = jax.block_until_ready((score, path, feats))

    # ----------------- reference check (numpy float64) -----------------
    def sigmoid(x):
        return 1.0 / (1.0 + np.exp(-x))

    p = {k: np.asarray(v, np.float64) for k, v in params.items()}
    tbl_np = np.asarray(embed_tbl, np.float64)
    trans_np = np.asarray(trans, np.float32)

    def lstm_dir(xs, wih, whh, b, h, c):
        outs = []
        for t in range(xs.shape[0]):
            x = xs[t:t + 1]
            gi = sigmoid(x @ wih[0] + h @ whh[0] + b[0:1])
            gf = sigmoid(x @ wih[1] + h @ whh[1] + b[1:2])
            gg = np.tanh(x @ wih[2] + h @ whh[2] + b[2:3])
            go = sigmoid(x @ wih[3] + h @ whh[3] + b[3:4])
            c = gf * c + gi * gg
            h = go * np.tanh(c)
            outs.append(h)
        return np.concatenate(outs, 0)

    for bi in range(B):
        emb_np = tbl_np[np.asarray(sentences[bi])]
        fwd = lstm_dir(emb_np, p["wih_f"], p["whh_f"], p["b_f"], p["h0"][0:1], p["c0"][0:1])
        bwd = lstm_dir(emb_np[::-1], p["wih_b"], p["whh_b"], p["b_b"], p["h0"][1:2], p["c0"][1:2])[::-1]
        feats_ref = np.concatenate([fwd, bwd], 1) @ p["wtag"] + p["btag"]
        # tolerance slightly loosened vs f32-only version: MXU operands are bf16 (f32 accumulation)
        np.testing.assert_allclose(np.asarray(feats[bi]), feats_ref, rtol=4e-2, atol=4e-2)

        # Viterbi reference run on the kernel's own feats (exact integer path comparison)
        feats_k = np.asarray(feats[bi], np.float32)
        fv = np.full((T,), -10000.0, np.float32)
        fv[tag_to_ix[START_TAG]] = 0.0
        bptrs = []
        for t in range(S):
            M = trans_np + fv[None, :]
            bptrs.append(M.argmax(1))
            fv = M.max(1) + feats_k[t]
        term = fv + trans_np[tag_to_ix[STOP_TAG]]
        best = int(term.argmax())
        score_ref = float(term.max())
        path_ref = [best]
        for t in range(S - 1, 0, -1):
            best = int(bptrs[t][best])
            path_ref.append(best)
        path_ref = path_ref[::-1]

        assert [int(x) for x in np.asarray(path[bi])] == path_ref, \
            (bi, list(np.asarray(path[bi])), path_ref)
        np.testing.assert_allclose(float(score[bi]), score_ref, rtol=1e-4, atol=1e-3)

    print("KERNEL_OK")
</pallas_src>

<mosaic_0001>
module attributes {stable_mosaic.version = 11 : i64} {
  func.func @bilstm_crf_kernel(%arg0: i32, %arg1: memref<4x8xi32, #tpu.memory_space<smem>>, %arg2: memref<112x128xbf16, #tpu.memory_space<vmem>>, %arg3: memref<24x128xf32, #tpu.memory_space<vmem>>, %arg4: memref<1x1x1xf32, #tpu.memory_space<vmem>>, %arg5: memref<1x1x8xi32, #tpu.memory_space<vmem>>, %arg6: memref<1x8x5xf32, #tpu.memory_space<vmem>>) attributes {dimension_semantics = [#tpu.dimension_semantics<parallel>], iteration_bounds = array<i64: 4>, scalar_prefetch = 1 : i64, scratch_operands = 0 : i64, tpu.core_type = #tpu.core_type<tc>, window_params = [{pipeline_mode = #tpu.pipeline_mode<synchronous>, transform_indices = @transform_0, window_bounds = array<i64: 112, 128>}, {pipeline_mode = #tpu.pipeline_mode<synchronous>, transform_indices = @transform_1, window_bounds = array<i64: 24, 128>}, {transform_indices = @transform_2, window_bounds = array<i64: 1, 1, 1>}, {transform_indices = @transform_3, window_bounds = array<i64: 1, 1, 8>}, {transform_indices = @transform_4, window_bounds = array<i64: 1, 8, 5>}]} {
    %0 = tpu.iota {dimensions = array<i32: 0>} : vector<8x1xi32>
    %c0_i32 = arith.constant 0 : i32
    %1 = vector.broadcast %c0_i32 : i32 to vector<8x1xi32>
    %c0_i32_0 = arith.constant 0 : i32
    %2 = vector.broadcast %c0_i32_0 : i32 to vector<8x1xi32>
    %3 = arith.cmpi eq, %0, %2 : vector<8x1xi32>
    %4 = arith.index_cast %arg0 : i32 to index
    %c0 = arith.constant 0 : index
    %5 = memref.load %arg1[%4, %c0] : memref<4x8xi32, #tpu.memory_space<smem>>
    %6 = vector.broadcast %5 : i32 to vector<8x1xi32>
    %7 = arith.select %3, %6, %1 : vector<8x1xi1>, vector<8x1xi32>
    %c1_i32 = arith.constant 1 : i32
    %8 = vector.broadcast %c1_i32 : i32 to vector<8x1xi32>
    %9 = arith.cmpi eq, %0, %8 : vector<8x1xi32>
    %10 = arith.index_cast %arg0 : i32 to index
    %c1 = arith.constant 1 : index
    %11 = memref.load %arg1[%10, %c1] : memref<4x8xi32, #tpu.memory_space<smem>>
    %12 = vector.broadcast %11 : i32 to vector<8x1xi32>
    %13 = arith.select %9, %12, %7 : vector<8x1xi1>, vector<8x1xi32>
    %c2_i32 = arith.constant 2 : i32
    %14 = vector.broadcast %c2_i32 : i32 to vector<8x1xi32>
    %15 = arith.cmpi eq, %0, %14 : vector<8x1xi32>
    %16 = arith.index_cast %arg0 : i32 to index
    %c2 = arith.constant 2 : index
    %17 = memref.load %arg1[%16, %c2] : memref<4x8xi32, #tpu.memory_space<smem>>
    %18 = vector.broadcast %17 : i32 to vector<8x1xi32>
    %19 = arith.select %15, %18, %13 : vector<8x1xi1>, vector<8x1xi32>
    %c3_i32 = arith.constant 3 : i32
    %20 = vector.broadcast %c3_i32 : i32 to vector<8x1xi32>
    %21 = arith.cmpi eq, %0, %20 : vector<8x1xi32>
    %22 = arith.index_cast %arg0 : i32 to index
    %c3 = arith.constant 3 : index
    %23 = memref.load %arg1[%22, %c3] : memref<4x8xi32, #tpu.memory_space<smem>>
    %24 = vector.broadcast %23 : i32 to vector<8x1xi32>
    %25 = arith.select %21, %24, %19 : vector<8x1xi1>, vector<8x1xi32>
    %c4_i32 = arith.constant 4 : i32
    %26 = vector.broadcast %c4_i32 : i32 to vector<8x1xi32>
    %27 = arith.cmpi eq, %0, %26 : vector<8x1xi32>
    %28 = arith.index_cast %arg0 : i32 to index
    %c4 = arith.constant 4 : index
    %29 = memref.load %arg1[%28, %c4] : memref<4x8xi32, #tpu.memory_space<smem>>
    %30 = vector.broadcast %29 : i32 to vector<8x1xi32>
    %31 = arith.select %27, %30, %25 : vector<8x1xi1>, vector<8x1xi32>
    %c5_i32 = arith.constant 5 : i32
    %32 = vector.broadcast %c5_i32 : i32 to vector<8x1xi32>
    %33 = arith.cmpi eq, %0, %32 : vector<8x1xi32>
    %34 = arith.index_cast %arg0 : i32 to index
    %c5 = arith.constant 5 : index
    %35 = memref.load %arg1[%34, %c5] : memref<4x8xi32, #tpu.memory_space<smem>>
    %36 = vector.broadcast %35 : i32 to vector<8x1xi32>
    %37 = arith.select %33, %36, %31 : vector<8x1xi1>, vector<8x1xi32>
    %c6_i32 = arith.constant 6 : i32
    %38 = vector.broadcast %c6_i32 : i32 to vector<8x1xi32>
    %39 = arith.cmpi eq, %0, %38 : vector<8x1xi32>
    %40 = arith.index_cast %arg0 : i32 to index
    %c6 = arith.constant 6 : index
    %41 = memref.load %arg1[%40, %c6] : memref<4x8xi32, #tpu.memory_space<smem>>
    %42 = vector.broadcast %41 : i32 to vector<8x1xi32>
    %43 = arith.select %39, %42, %37 : vector<8x1xi1>, vector<8x1xi32>
    %c7_i32 = arith.constant 7 : i32
    %44 = vector.broadcast %c7_i32 : i32 to vector<8x1xi32>
    %45 = arith.cmpi eq, %0, %44 : vector<8x1xi32>
    %46 = arith.index_cast %arg0 : i32 to index
    %c7 = arith.constant 7 : index
    %47 = memref.load %arg1[%46, %c7] : memref<4x8xi32, #tpu.memory_space<smem>>
    %48 = vector.broadcast %47 : i32 to vector<8x1xi32>
    %49 = arith.select %45, %48, %43 : vector<8x1xi1>, vector<8x1xi32>
    %50 = tpu.iota {dimensions = array<i32: 1>} : vector<8x20xi32>
    %51 = vector.broadcast %49 : vector<8x1xi32> to vector<8x20xi32>
    %52 = arith.cmpi eq, %50, %51 : vector<8x20xi32>
    %53 = arith.extui %52 : vector<8x20xi1> to vector<8x20xi32>
    %54 = arith.sitofp %53 : vector<8x20xi32> to vector<8x20xf32>
    %55 = arith.truncf %54 : vector<8x20xf32> to vector<8x20xbf16>
    %c80 = arith.constant 80 : index
    %c0_1 = arith.constant 0 : index
    %56 = vector.load %arg2[%c80, %c0_1] : memref<112x128xbf16, #tpu.memory_space<vmem>>, vector<20x16xbf16>
    %cst = arith.constant dense<0.000000e+00> : vector<8x16xf32>
    %57 = tpu.matmul %55, %56, %cst {dimension_numbers = #tpu.dot_dimension_numbers<[1], [0], [0], [1], [0, 0, 1, 1], [], []>} : vector<8x20xbf16>, vector<20x16xbf16>, vector<8x16xf32> -> vector<8x16xf32>
    %c0_2 = arith.constant 0 : index
    %c0_3 = arith.constant 0 : index
    %58 = vector.load %arg2[%c0_2, %c0_3] : memref<112x128xbf16, #tpu.memory_space<vmem>>, vector<16x128xbf16>
    %c16 = arith.constant 16 : index
    %c0_4 = arith.constant 0 : index
    %59 = vector.load %arg2[%c16, %c0_4] : memref<112x128xbf16, #tpu.memory_space<vmem>>, vector<32x128xbf16>
    %c0_5 = arith.constant 0 : index
    %c0_6 = arith.constant 0 : index
    %60 = vector.load %arg3[%c0_5, %c0_6] : memref<24x128xf32, #tpu.memory_space<vmem>>, vector<1x128xf32>
    %61 = arith.truncf %57 : vector<8x16xf32> to vector<8x16xbf16>
    %cst_7 = arith.constant dense<0.000000e+00> : vector<8x128xf32>
    %62 = tpu.matmul %61, %58, %cst_7 {dimension_numbers = #tpu.dot_dimension_numbers<[1], [0], [0], [1], [0, 0, 1, 1], [], []>} : vector<8x16xbf16>, vector<16x128xbf16>, vector<8x128xf32> -> vector<8x128xf32>
    %63 = vector.broadcast %60 : vector<1x128xf32> to vector<8x128xf32>
    %64 = arith.addf %62, %63 : vector<8x128xf32>
    %c1_8 = arith.constant 1 : index
    %c0_9 = arith.constant 0 : index
    %65 = vector.load %arg3[%c1_8, %c0_9] : memref<24x128xf32, #tpu.memory_space<vmem>>, vector<1x32xf32>
    %c2_10 = arith.constant 2 : index
    %c0_11 = arith.constant 0 : index
    %66 = vector.load %arg3[%c2_10, %c0_11] : memref<24x128xf32, #tpu.memory_space<vmem>>, vector<1x32xf32>
    %67 = tpu.iota {dimensions = array<i32: 1>} : vector<1x128xi32>
    %c32_i32 = arith.constant 32 : i32
    %c0_i32_12 = arith.constant 0 : i32
    %68 = arith.cmpi eq, %c32_i32, %c0_i32_12 : i32
    %c1_i32_13 = arith.constant 1 : i32
    %69 = arith.select %68, %c1_i32_13, %c32_i32 : i32
    %70 = vector.broadcast %69 : i32 to vector<1x128xi32>
    %71 = arith.remsi %67, %70 : vector<1x128xi32>
    %c0_i32_14 = arith.constant 0 : i32
    %72 = vector.broadcast %c0_i32_14 : i32 to vector<1x128xi32>
    %73 = arith.cmpi ne, %71, %72 : vector<1x128xi32>
    %c0_i32_15 = arith.constant 0 : i32
    %74 = vector.broadcast %c0_i32_15 : i32 to vector<1x128xi32>
    %75 = arith.cmpi slt, %71, %74 : vector<1x128xi32>
    %c0_i32_16 = arith.constant 0 : i32
    %76 = arith.cmpi slt, %69, %c0_i32_16 : i32
    %77 = vector.broadcast %76 : i1 to vector<1x128xi1>
    %78 = vector.broadcast %77 : vector<1x128xi1> to vector<1x128xi1>
    %79 = arith.xori %75, %78 : vector<1x128xi1>
    %80 = arith.andi %79, %73 : vector<1x128xi1>
    %81 = vector.broadcast %69 : i32 to vector<1x128xi32>
    %82 = arith.addi %71, %81 : vector<1x128xi32>
    %83 = arith.select %80, %82, %71 : vector<1x128xi1>, vector<1x128xi32>
    %c16_i32 = arith.constant 16 : i32
    %84 = vector.broadcast %c16_i32 : i32 to vector<1x128xi32>
    %85 = arith.cmpi slt, %83, %84 : vector<1x128xi32>
    %86 = tpu.iota {dimensions = array<i32: 0>} : vector<8x32xi32>
    %87 = tpu.iota {dimensions = array<i32: 1>} : vector<8x32xi32>
    %c16_i32_17 = arith.constant 16 : i32
    %88 = vector.broadcast %c16_i32_17 : i32 to vector<8x32xi32>
    %89 = arith.cmpi slt, %87, %88 : vector<8x32xi32>
    %cst_18 = arith.constant 0.000000e+00 : f32
    %90 = vector.broadcast %cst_18 : f32 to vector<8x32xf32>
    %91 = vector.extract_strided_slice %64 {offsets = [0, 0], sizes = [1, 128], strides = [1, 1]} : vector<8x128xf32> to vector<1x128xf32>
    %92 = vector.extract_strided_slice %64 {offsets = [7, 0], sizes = [1, 128], strides = [1, 1]} : vector<8x128xf32> to vector<1x128xf32>
    %93 = arith.select %85, %91, %92 : vector<1x128xi1>, vector<1x128xf32>
    %94 = arith.truncf %65 : vector<1x32xf32> to vector<1x32xbf16>
    %cst_19 = arith.constant dense<0.000000e+00> : vector<1x128xf32>
    %95 = tpu.matmul %94, %59, %cst_19 {dimension_numbers = #tpu.dot_dimension_numbers<[1], [0], [0], [1], [0, 0, 1, 1], [], []>} : vector<1x32xbf16>, vector<32x128xbf16>, vector<1x128xf32> -> vector<1x128xf32>
    %96 = arith.addf %93, %95 : vector<1x128xf32>
    %97 = arith.negf %96 : vector<1x128xf32>
    %98 = math.exp %97 : vector<1x128xf32>
    %cst_20 = arith.constant 1.000000e+00 : f32
    %99 = vector.broadcast %cst_20 : f32 to vector<1x128xf32>
    %100 = arith.addf %99, %98 : vector<1x128xf32>
    %101 = arith.divf %99, %100 : vector<1x128xf32>
    %102 = math.tanh %96 : vector<1x128xf32>
    %103 = vector.extract_strided_slice %101 {offsets = [0, 0], sizes = [1, 32], strides = [1, 1]} : vector<1x128xf32> to vector<1x32xf32>
    %104 = vector.extract_strided_slice %101 {offsets = [0, 32], sizes = [1, 32], strides = [1, 1]} : vector<1x128xf32> to vector<1x32xf32>
    %105 = vector.extract_strided_slice %102 {offsets = [0, 64], sizes = [1, 32], strides = [1, 1]} : vector<1x128xf32> to vector<1x32xf32>
    %106 = vector.extract_strided_slice %101 {offsets = [0, 96], sizes = [1, 32], strides = [1, 1]} : vector<1x128xf32> to vector<1x32xf32>
    %107 = arith.mulf %104, %66 : vector<1x32xf32>
    %108 = arith.mulf %103, %105 : vector<1x32xf32>
    %109 = arith.addf %107, %108 : vector<1x32xf32>
    %110 = math.tanh %109 : vector<1x32xf32>
    %111 = arith.mulf %106, %110 : vector<1x32xf32>
    %112 = vector.shape_cast %111 : vector<1x32xf32> to vector<1x32xf32>
    %113 = vector.broadcast %112 : vector<1x32xf32> to vector<8x32xf32>
    %c0_i32_21 = arith.constant 0 : i32
    %114 = vector.broadcast %c0_i32_21 : i32 to vector<8x32xi32>
    %115 = arith.cmpi eq, %86, %114 : vector<8x32xi32>
    %116 = arith.andi %115, %89 : vector<8x32xi1>
    %117 = arith.select %116, %113, %90 : vector<8x32xi1>, vector<8x32xf32>
    %c7_i32_22 = arith.constant 7 : i32
    %118 = vector.broadcast %c7_i32_22 : i32 to vector<8x32xi32>
    %119 = arith.cmpi eq, %86, %118 : vector<8x32xi32>
    %cst_23 = arith.constant dense<true> : vector<8x32xi1>
    %120 = arith.xori %89, %cst_23 : vector<8x32xi1>
    %121 = arith.andi %119, %120 : vector<8x32xi1>
    %122 = arith.select %121, %113, %117 : vector<8x32xi1>, vector<8x32xf32>
    %123 = vector.extract_strided_slice %64 {offsets = [1, 0], sizes = [1, 128], strides = [1, 1]} : vector<8x128xf32> to vector<1x128xf32>
    %124 = vector.extract_strided_slice %64 {offsets = [6, 0], sizes = [1, 128], strides = [1, 1]} : vector<8x128xf32> to vector<1x128xf32>
    %125 = arith.select %85, %123, %124 : vector<1x128xi1>, vector<1x128xf32>
    %126 = arith.truncf %111 : vector<1x32xf32> to vector<1x32xbf16>
    %cst_24 = arith.constant dense<0.000000e+00> : vector<1x128xf32>
    %127 = tpu.matmul %126, %59, %cst_24 {dimension_numbers = #tpu.dot_dimension_numbers<[1], [0], [0], [1], [0, 0, 1, 1], [], []>} : vector<1x32xbf16>, vector<32x128xbf16>, vector<1x128xf32> -> vector<1x128xf32>
    %128 = arith.addf %125, %127 : vector<1x128xf32>
    %129 = arith.negf %128 : vector<1x128xf32>
    %130 = math.exp %129 : vector<1x128xf32>
    %cst_25 = arith.constant 1.000000e+00 : f32
    %131 = vector.broadcast %cst_25 : f32 to vector<1x128xf32>
    %132 = arith.addf %131, %130 : vector<1x128xf32>
    %133 = arith.divf %131, %132 : vector<1x128xf32>
    %134 = math.tanh %128 : vector<1x128xf32>
    %135 = vector.extract_strided_slice %133 {offsets = [0, 0], sizes = [1, 32], strides = [1, 1]} : vector<1x128xf32> to vector<1x32xf32>
    %136 = vector.extract_strided_slice %133 {offsets = [0, 32], sizes = [1, 32], strides = [1, 1]} : vector<1x128xf32> to vector<1x32xf32>
    %137 = vector.extract_strided_slice %134 {offsets = [0, 64], sizes = [1, 32], strides = [1, 1]} : vector<1x128xf32> to vector<1x32xf32>
    %138 = vector.extract_strided_slice %133 {offsets = [0, 96], sizes = [1, 32], strides = [1, 1]} : vector<1x128xf32> to vector<1x32xf32>
    %139 = arith.mulf %136, %109 : vector<1x32xf32>
    %140 = arith.mulf %135, %137 : vector<1x32xf32>
    %141 = arith.addf %139, %140 : vector<1x32xf32>
    %142 = math.tanh %141 : vector<1x32xf32>
    %143 = arith.mulf %138, %142 : vector<1x32xf32>
    %144 = vector.shape_cast %143 : vector<1x32xf32> to vector<1x32xf32>
    %145 = vector.broadcast %144 : vector<1x32xf32> to vector<8x32xf32>
    %c1_i32_26 = arith.constant 1 : i32
    %146 = vector.broadcast %c1_i32_26 : i32 to vector<8x32xi32>
    %147 = arith.cmpi eq, %86, %146 : vector<8x32xi32>
    %148 = arith.andi %147, %89 : vector<8x32xi1>
    %149 = arith.select %148, %145, %122 : vector<8x32xi1>, vector<8x32xf32>
    %c6_i32_27 = arith.constant 6 : i32
    %150 = vector.broadcast %c6_i32_27 : i32 to vector<8x32xi32>
    %151 = arith.cmpi eq, %86, %150 : vector<8x32xi32>
    %cst_28 = arith.constant dense<true> : vector<8x32xi1>
    %152 = arith.xori %89, %cst_28 : vector<8x32xi1>
    %153 = arith.andi %151, %152 : vector<8x32xi1>
    %154 = arith.select %153, %145, %149 : vector<8x32xi1>, vector<8x32xf32>
    %155 = vector.extract_strided_slice %64 {offsets = [2, 0], sizes = [1, 128], strides = [1, 1]} : vector<8x128xf32> to vector<1x128xf32>
    %156 = vector.extract_strided_slice %64 {offsets = [5, 0], sizes = [1, 128], strides = [1, 1]} : vector<8x128xf32> to vector<1x128xf32>
    %157 = arith.select %85, %155, %156 : vector<1x128xi1>, vector<1x128xf32>
    %158 = arith.truncf %143 : vector<1x32xf32> to vector<1x32xbf16>
    %cst_29 = arith.constant dense<0.000000e+00> : vector<1x128xf32>
    %159 = tpu.matmul %158, %59, %cst_29 {dimension_numbers = #tpu.dot_dimension_numbers<[1], [0], [0], [1], [0, 0, 1, 1], [], []>} : vector<1x32xbf16>, vector<32x128xbf16>, vector<1x128xf32> -> vector<1x128xf32>
    %160 = arith.addf %157, %159 : vector<1x128xf32>
    %161 = arith.negf %160 : vector<1x128xf32>
    %162 = math.exp %161 : vector<1x128xf32>
    %cst_30 = arith.constant 1.000000e+00 : f32
    %163 = vector.broadcast %cst_30 : f32 to vector<1x128xf32>
    %164 = arith.addf %163, %162 : vector<1x128xf32>
    %165 = arith.divf %163, %164 : vector<1x128xf32>
    %166 = math.tanh %160 : vector<1x128xf32>
    %167 = vector.extract_strided_slice %165 {offsets = [0, 0], sizes = [1, 32], strides = [1, 1]} : vector<1x128xf32> to vector<1x32xf32>
    %168 = vector.extract_strided_slice %165 {offsets = [0, 32], sizes = [1, 32], strides = [1, 1]} : vector<1x128xf32> to vector<1x32xf32>
    %169 = vector.extract_strided_slice %166 {offsets = [0, 64], sizes = [1, 32], strides = [1, 1]} : vector<1x128xf32> to vector<1x32xf32>
    %170 = vector.extract_strided_slice %165 {offsets = [0, 96], sizes = [1, 32], strides = [1, 1]} : vector<1x128xf32> to vector<1x32xf32>
    %171 = arith.mulf %168, %141 : vector<1x32xf32>
    %172 = arith.mulf %167, %169 : vector<1x32xf32>
    %173 = arith.addf %171, %172 : vector<1x32xf32>
    %174 = math.tanh %173 : vector<1x32xf32>
    %175 = arith.mulf %170, %174 : vector<1x32xf32>
    %176 = vector.shape_cast %175 : vector<1x32xf32> to vector<1x32xf32>
    %177 = vector.broadcast %176 : vector<1x32xf32> to vector<8x32xf32>
    %c2_i32_31 = arith.constant 2 : i32
    %178 = vector.broadcast %c2_i32_31 : i32 to vector<8x32xi32>
    %179 = arith.cmpi eq, %86, %178 : vector<8x32xi32>
    %180 = arith.andi %179, %89 : vector<8x32xi1>
    %181 = arith.select %180, %177, %154 : vector<8x32xi1>, vector<8x32xf32>
    %c5_i32_32 = arith.constant 5 : i32
    %182 = vector.broadcast %c5_i32_32 : i32 to vector<8x32xi32>
    %183 = arith.cmpi eq, %86, %182 : vector<8x32xi32>
    %cst_33 = arith.constant dense<true> : vector<8x32xi1>
    %184 = arith.xori %89, %cst_33 : vector<8x32xi1>
    %185 = arith.andi %183, %184 : vector<8x32xi1>
    %186 = arith.select %185, %177, %181 : vector<8x32xi1>, vector<8x32xf32>
    %187 = vector.extract_strided_slice %64 {offsets = [3, 0], sizes = [1, 128], strides = [1, 1]} : vector<8x128xf32> to vector<1x128xf32>
    %188 = vector.extract_strided_slice %64 {offsets = [4, 0], sizes = [1, 128], strides = [1, 1]} : vector<8x128xf32> to vector<1x128xf32>
    %189 = arith.select %85, %187, %188 : vector<1x128xi1>, vector<1x128xf32>
    %190 = arith.truncf %175 : vector<1x32xf32> to vector<1x32xbf16>
    %cst_34 = arith.constant dense<0.000000e+00> : vector<1x128xf32>
    %191 = tpu.matmul %190, %59, %cst_34 {dimension_numbers = #tpu.dot_dimension_numbers<[1], [0], [0], [1], [0, 0, 1, 1], [], []>} : vector<1x32xbf16>, vector<32x128xbf16>, vector<1x128xf32> -> vector<1x128xf32>
    %192 = arith.addf %189, %191 : vector<1x128xf32>
    %193 = arith.negf %192 : vector<1x128xf32>
    %194 = math.exp %193 : vector<1x128xf32>
    %cst_35 = arith.constant 1.000000e+00 : f32
    %195 = vector.broadcast %cst_35 : f32 to vector<1x128xf32>
    %196 = arith.addf %195, %194 : vector<1x128xf32>
    %197 = arith.divf %195, %196 : vector<1x128xf32>
    %198 = math.tanh %192 : vector<1x128xf32>
    %199 = vector.extract_strided_slice %197 {offsets = [0, 0], sizes = [1, 32], strides = [1, 1]} : vector<1x128xf32> to vector<1x32xf32>
    %200 = vector.extract_strided_slice %197 {offsets = [0, 32], sizes = [1, 32], strides = [1, 1]} : vector<1x128xf32> to vector<1x32xf32>
    %201 = vector.extract_strided_slice %198 {offsets = [0, 64], sizes = [1, 32], strides = [1, 1]} : vector<1x128xf32> to vector<1x32xf32>
    %202 = vector.extract_strided_slice %197 {offsets = [0, 96], sizes = [1, 32], strides = [1, 1]} : vector<1x128xf32> to vector<1x32xf32>
    %203 = arith.mulf %200, %173 : vector<1x32xf32>
    %204 = arith.mulf %199, %201 : vector<1x32xf32>
    %205 = arith.addf %203, %204 : vector<1x32xf32>
    %206 = math.tanh %205 : vector<1x32xf32>
    %207 = arith.mulf %202, %206 : vector<1x32xf32>
    %208 = vector.shape_cast %207 : vector<1x32xf32> to vector<1x32xf32>
    %209 = vector.broadcast %208 : vector<1x32xf32> to vector<8x32xf32>
    %c3_i32_36 = arith.constant 3 : i32
    %210 = vector.broadcast %c3_i32_36 : i32 to vector<8x32xi32>
    %211 = arith.cmpi eq, %86, %210 : vector<8x32xi32>
    %212 = arith.andi %211, %89 : vector<8x32xi1>
    %213 = arith.select %212, %209, %186 : vector<8x32xi1>, vector<8x32xf32>
    %c4_i32_37 = arith.constant 4 : i32
    %214 = vector.broadcast %c4_i32_37 : i32 to vector<8x32xi32>
    %215 = arith.cmpi eq, %86, %214 : vector<8x32xi32>
    %cst_38 = arith.constant dense<true> : vector<8x32xi1>
    %216 = arith.xori %89, %cst_38 : vector<8x32xi1>
    %217 = arith.andi %215, %216 : vector<8x32xi1>
    %218 = arith.select %217, %209, %213 : vector<8x32xi1>, vector<8x32xf32>
    %219 = vector.extract_strided_slice %64 {offsets = [4, 0], sizes = [1, 128], strides = [1, 1]} : vector<8x128xf32> to vector<1x128xf32>
    %220 = vector.extract_strided_slice %64 {offsets = [3, 0], sizes = [1, 128], strides = [1, 1]} : vector<8x128xf32> to vector<1x128xf32>
    %221 = arith.select %85, %219, %220 : vector<1x128xi1>, vector<1x128xf32>
    %222 = arith.truncf %207 : vector<1x32xf32> to vector<1x32xbf16>
    %cst_39 = arith.constant dense<0.000000e+00> : vector<1x128xf32>
    %223 = tpu.matmul %222, %59, %cst_39 {dimension_numbers = #tpu.dot_dimension_numbers<[1], [0], [0], [1], [0, 0, 1, 1], [], []>} : vector<1x32xbf16>, vector<32x128xbf16>, vector<1x128xf32> -> vector<1x128xf32>
    %224 = arith.addf %221, %223 : vector<1x128xf32>
    %225 = arith.negf %224 : vector<1x128xf32>
    %226 = math.exp %225 : vector<1x128xf32>
    %cst_40 = arith.constant 1.000000e+00 : f32
    %227 = vector.broadcast %cst_40 : f32 to vector<1x128xf32>
    %228 = arith.addf %227, %226 : vector<1x128xf32>
    %229 = arith.divf %227, %228 : vector<1x128xf32>
    %230 = math.tanh %224 : vector<1x128xf32>
    %231 = vector.extract_strided_slice %229 {offsets = [0, 0], sizes = [1, 32], strides = [1, 1]} : vector<1x128xf32> to vector<1x32xf32>
    %232 = vector.extract_strided_slice %229 {offsets = [0, 32], sizes = [1, 32], strides = [1, 1]} : vector<1x128xf32> to vector<1x32xf32>
    %233 = vector.extract_strided_slice %230 {offsets = [0, 64], sizes = [1, 32], strides = [1, 1]} : vector<1x128xf32> to vector<1x32xf32>
    %234 = vector.extract_strided_slice %229 {offsets = [0, 96], sizes = [1, 32], strides = [1, 1]} : vector<1x128xf32> to vector<1x32xf32>
    %235 = arith.mulf %232, %205 : vector<1x32xf32>
    %236 = arith.mulf %231, %233 : vector<1x32xf32>
    %237 = arith.addf %235, %236 : vector<1x32xf32>
    %238 = math.tanh %237 : vector<1x32xf32>
    %239 = arith.mulf %234, %238 : vector<1x32xf32>
    %240 = vector.shape_cast %239 : vector<1x32xf32> to vector<1x32xf32>
    %241 = vector.broadcast %240 : vector<1x32xf32> to vector<8x32xf32>
    %c4_i32_41 = arith.constant 4 : i32
    %242 = vector.broadcast %c4_i32_41 : i32 to vector<8x32xi32>
    %243 = arith.cmpi eq, %86, %242 : vector<8x32xi32>
    %244 = arith.andi %243, %89 : vector<8x32xi1>
    %245 = arith.select %244, %241, %218 : vector<8x32xi1>, vector<8x32xf32>
    %c3_i32_42 = arith.constant 3 : i32
    %246 = vector.broadcast %c3_i32_42 : i32 to vector<8x32xi32>
    %247 = arith.cmpi eq, %86, %246 : vector<8x32xi32>
    %cst_43 = arith.constant dense<true> : vector<8x32xi1>
    %248 = arith.xori %89, %cst_43 : vector<8x32xi1>
    %249 = arith.andi %247, %248 : vector<8x32xi1>
    %250 = arith.select %249, %241, %245 : vector<8x32xi1>, vector<8x32xf32>
    %251 = vector.extract_strided_slice %64 {offsets = [5, 0], sizes = [1, 128], strides = [1, 1]} : vector<8x128xf32> to vector<1x128xf32>
    %252 = vector.extract_strided_slice %64 {offsets = [2, 0], sizes = [1, 128], strides = [1, 1]} : vector<8x128xf32> to vector<1x128xf32>
    %253 = arith.select %85, %251, %252 : vector<1x128xi1>, vector<1x128xf32>
    %254 = arith.truncf %239 : vector<1x32xf32> to vector<1x32xbf16>
    %cst_44 = arith.constant dense<0.000000e+00> : vector<1x128xf32>
    %255 = tpu.matmul %254, %59, %cst_44 {dimension_numbers = #tpu.dot_dimension_numbers<[1], [0], [0], [1], [0, 0, 1, 1], [], []>} : vector<1x32xbf16>, vector<32x128xbf16>, vector<1x128xf32> -> vector<1x128xf32>
    %256 = arith.addf %253, %255 : vector<1x128xf32>
    %257 = arith.negf %256 : vector<1x128xf32>
    %258 = math.exp %257 : vector<1x128xf32>
    %cst_45 = arith.constant 1.000000e+00 : f32
    %259 = vector.broadcast %cst_45 : f32 to vector<1x128xf32>
    %260 = arith.addf %259, %258 : vector<1x128xf32>
    %261 = arith.divf %259, %260 : vector<1x128xf32>
    %262 = math.tanh %256 : vector<1x128xf32>
    %263 = vector.extract_strided_slice %261 {offsets = [0, 0], sizes = [1, 32], strides = [1, 1]} : vector<1x128xf32> to vector<1x32xf32>
    %264 = vector.extract_strided_slice %261 {offsets = [0, 32], sizes = [1, 32], strides = [1, 1]} : vector<1x128xf32> to vector<1x32xf32>
    %265 = vector.extract_strided_slice %262 {offsets = [0, 64], sizes = [1, 32], strides = [1, 1]} : vector<1x128xf32> to vector<1x32xf32>
    %266 = vector.extract_strided_slice %261 {offsets = [0, 96], sizes = [1, 32], strides = [1, 1]} : vector<1x128xf32> to vector<1x32xf32>
    %267 = arith.mulf %264, %237 : vector<1x32xf32>
    %268 = arith.mulf %263, %265 : vector<1x32xf32>
    %269 = arith.addf %267, %268 : vector<1x32xf32>
    %270 = math.tanh %269 : vector<1x32xf32>
    %271 = arith.mulf %266, %270 : vector<1x32xf32>
    %272 = vector.shape_cast %271 : vector<1x32xf32> to vector<1x32xf32>
    %273 = vector.broadcast %272 : vector<1x32xf32> to vector<8x32xf32>
    %c5_i32_46 = arith.constant 5 : i32
    %274 = vector.broadcast %c5_i32_46 : i32 to vector<8x32xi32>
    %275 = arith.cmpi eq, %86, %274 : vector<8x32xi32>
    %276 = arith.andi %275, %89 : vector<8x32xi1>
    %277 = arith.select %276, %273, %250 : vector<8x32xi1>, vector<8x32xf32>
    %c2_i32_47 = arith.constant 2 : i32
    %278 = vector.broadcast %c2_i32_47 : i32 to vector<8x32xi32>
    %279 = arith.cmpi eq, %86, %278 : vector<8x32xi32>
    %cst_48 = arith.constant dense<true> : vector<8x32xi1>
    %280 = arith.xori %89, %cst_48 : vector<8x32xi1>
    %281 = arith.andi %279, %280 : vector<8x32xi1>
    %282 = arith.select %281, %273, %277 : vector<8x32xi1>, vector<8x32xf32>
    %283 = vector.extract_strided_slice %64 {offsets = [6, 0], sizes = [1, 128], strides = [1, 1]} : vector<8x128xf32> to vector<1x128xf32>
    %284 = vector.extract_strided_slice %64 {offsets = [1, 0], sizes = [1, 128], strides = [1, 1]} : vector<8x128xf32> to vector<1x128xf32>
    %285 = arith.select %85, %283, %284 : vector<1x128xi1>, vector<1x128xf32>
    %286 = arith.truncf %271 : vector<1x32xf32> to vector<1x32xbf16>
    %cst_49 = arith.constant dense<0.000000e+00> : vector<1x128xf32>
    %287 = tpu.matmul %286, %59, %cst_49 {dimension_numbers = #tpu.dot_dimension_numbers<[1], [0], [0], [1], [0, 0, 1, 1], [], []>} : vector<1x32xbf16>, vector<32x128xbf16>, vector<1x128xf32> -> vector<1x128xf32>
    %288 = arith.addf %285, %287 : vector<1x128xf32>
    %289 = arith.negf %288 : vector<1x128xf32>
    %290 = math.exp %289 : vector<1x128xf32>
    %cst_50 = arith.constant 1.000000e+00 : f32
    %291 = vector.broadcast %cst_50 : f32 to vector<1x128xf32>
    %292 = arith.addf %291, %290 : vector<1x128xf32>
    %293 = arith.divf %291, %292 : vector<1x128xf32>
    %294 = math.tanh %288 : vector<1x128xf32>
    %295 = vector.extract_strided_slice %293 {offsets = [0, 0], sizes = [1, 32], strides = [1, 1]} : vector<1x128xf32> to vector<1x32xf32>
    %296 = vector.extract_strided_slice %293 {offsets = [0, 32], sizes = [1, 32], strides = [1, 1]} : vector<1x128xf32> to vector<1x32xf32>
    %297 = vector.extract_strided_slice %294 {offsets = [0, 64], sizes = [1, 32], strides = [1, 1]} : vector<1x128xf32> to vector<1x32xf32>
    %298 = vector.extract_strided_slice %293 {offsets = [0, 96], sizes = [1, 32], strides = [1, 1]} : vector<1x128xf32> to vector<1x32xf32>
    %299 = arith.mulf %296, %269 : vector<1x32xf32>
    %300 = arith.mulf %295, %297 : vector<1x32xf32>
    %301 = arith.addf %299, %300 : vector<1x32xf32>
    %302 = math.tanh %301 : vector<1x32xf32>
    %303 = arith.mulf %298, %302 : vector<1x32xf32>
    %304 = vector.shape_cast %303 : vector<1x32xf32> to vector<1x32xf32>
    %305 = vector.broadcast %304 : vector<1x32xf32> to vector<8x32xf32>
    %c6_i32_51 = arith.constant 6 : i32
    %306 = vector.broadcast %c6_i32_51 : i32 to vector<8x32xi32>
    %307 = arith.cmpi eq, %86, %306 : vector<8x32xi32>
    %308 = arith.andi %307, %89 : vector<8x32xi1>
    %309 = arith.select %308, %305, %282 : vector<8x32xi1>, vector<8x32xf32>
    %c1_i32_52 = arith.constant 1 : i32
    %310 = vector.broadcast %c1_i32_52 : i32 to vector<8x32xi32>
    %311 = arith.cmpi eq, %86, %310 : vector<8x32xi32>
    %cst_53 = arith.constant dense<true> : vector<8x32xi1>
    %312 = arith.xori %89, %cst_53 : vector<8x32xi1>
    %313 = arith.andi %311, %312 : vector<8x32xi1>
    %314 = arith.select %313, %305, %309 : vector<8x32xi1>, vector<8x32xf32>
    %315 = vector.extract_strided_slice %64 {offsets = [7, 0], sizes = [1, 128], strides = [1, 1]} : vector<8x128xf32> to vector<1x128xf32>
    %316 = vector.extract_strided_slice %64 {offsets = [0, 0], sizes = [1, 128], strides = [1, 1]} : vector<8x128xf32> to vector<1x128xf32>
    %317 = arith.select %85, %315, %316 : vector<1x128xi1>, vector<1x128xf32>
    %318 = arith.truncf %303 : vector<1x32xf32> to vector<1x32xbf16>
    %cst_54 = arith.constant dense<0.000000e+00> : vector<1x128xf32>
    %319 = tpu.matmul %318, %59, %cst_54 {dimension_numbers = #tpu.dot_dimension_numbers<[1], [0], [0], [1], [0, 0, 1, 1], [], []>} : vector<1x32xbf16>, vector<32x128xbf16>, vector<1x128xf32> -> vector<1x128xf32>
    %320 = arith.addf %317, %319 : vector<1x128xf32>
    %321 = arith.negf %320 : vector<1x128xf32>
    %322 = math.exp %321 : vector<1x128xf32>
    %cst_55 = arith.constant 1.000000e+00 : f32
    %323 = vector.broadcast %cst_55 : f32 to vector<1x128xf32>
    %324 = arith.addf %323, %322 : vector<1x128xf32>
    %325 = arith.divf %323, %324 : vector<1x128xf32>
    %326 = math.tanh %320 : vector<1x128xf32>
    %327 = vector.extract_strided_slice %325 {offsets = [0, 0], sizes = [1, 32], strides = [1, 1]} : vector<1x128xf32> to vector<1x32xf32>
    %328 = vector.extract_strided_slice %325 {offsets = [0, 32], sizes = [1, 32], strides = [1, 1]} : vector<1x128xf32> to vector<1x32xf32>
    %329 = vector.extract_strided_slice %326 {offsets = [0, 64], sizes = [1, 32], strides = [1, 1]} : vector<1x128xf32> to vector<1x32xf32>
    %330 = vector.extract_strided_slice %325 {offsets = [0, 96], sizes = [1, 32], strides = [1, 1]} : vector<1x128xf32> to vector<1x32xf32>
    %331 = arith.mulf %328, %301 : vector<1x32xf32>
    %332 = arith.mulf %327, %329 : vector<1x32xf32>
    %333 = arith.addf %331, %332 : vector<1x32xf32>
    %334 = math.tanh %333 : vector<1x32xf32>
    %335 = arith.mulf %330, %334 : vector<1x32xf32>
    %336 = vector.shape_cast %335 : vector<1x32xf32> to vector<1x32xf32>
    %337 = vector.broadcast %336 : vector<1x32xf32> to vector<8x32xf32>
    %c7_i32_56 = arith.constant 7 : i32
    %338 = vector.broadcast %c7_i32_56 : i32 to vector<8x32xi32>
    %339 = arith.cmpi eq, %86, %338 : vector<8x32xi32>
    %340 = arith.andi %339, %89 : vector<8x32xi1>
    %341 = arith.select %340, %337, %314 : vector<8x32xi1>, vector<8x32xf32>
    %c0_i32_57 = arith.constant 0 : i32
    %342 = vector.broadcast %c0_i32_57 : i32 to vector<8x32xi32>
    %343 = arith.cmpi eq, %86, %342 : vector<8x32xi32>
    %cst_58 = arith.constant dense<true> : vector<8x32xi1>
    %344 = arith.xori %89, %cst_58 : vector<8x32xi1>
    %345 = arith.andi %343, %344 : vector<8x32xi1>
    %346 = arith.select %345, %337, %341 : vector<8x32xi1>, vector<8x32xf32>
    %c48 = arith.constant 48 : index
    %c0_59 = arith.constant 0 : index
    %347 = vector.load %arg2[%c48, %c0_59] : memref<112x128xbf16, #tpu.memory_space<vmem>>, vector<32x5xbf16>
    %c3_60 = arith.constant 3 : index
    %c0_61 = arith.constant 0 : index
    %348 = vector.load %arg3[%c3_60, %c0_61] : memref<24x128xf32, #tpu.memory_space<vmem>>, vector<1x5xf32>
    %349 = arith.truncf %346 : vector<8x32xf32> to vector<8x32xbf16>
    %cst_62 = arith.constant dense<0.000000e+00> : vector<8x5xf32>
    %350 = tpu.matmul %349, %347, %cst_62 {dimension_numbers = #tpu.dot_dimension_numbers<[1], [0], [0], [1], [0, 0, 1, 1], [], []>} : vector<8x32xbf16>, vector<32x5xbf16>, vector<8x5xf32> -> vector<8x5xf32>
    %351 = vector.broadcast %348 : vector<1x5xf32> to vector<8x5xf32>
    %352 = arith.addf %350, %351 : vector<8x5xf32>
    %c0_63 = arith.constant 0 : index
    %c0_64 = arith.constant 0 : index
    %c0_65 = arith.constant 0 : index
    %353 = vector.load %arg6[%c0_63, %c0_64, %c0_65] : memref<1x8x5xf32, #tpu.memory_space<vmem>>, vector<1x8x5xf32>
    %354 = vector.shape_cast %353 : vector<1x8x5xf32> to vector<8x5xf32>
    %355 = vector.shape_cast %352 : vector<8x5xf32> to vector<1x8x5xf32>
    tpu.vector_store %arg6[%c0_63, %c0_64, %c0_65], %355 {strides = array<i32>} : memref<1x8x5xf32, #tpu.memory_space<vmem>>, vector<1x8x5xf32>,
    %c8 = arith.constant 8 : index
    %c0_66 = arith.constant 0 : index
    %356 = vector.load %arg3[%c8, %c0_66] : memref<24x128xf32, #tpu.memory_space<vmem>>, vector<5x5xf32>
    %c16_67 = arith.constant 16 : index
    %c0_68 = arith.constant 0 : index
    %357 = vector.load %arg3[%c16_67, %c0_68] : memref<24x128xf32, #tpu.memory_space<vmem>>, vector<5x5xf32>
    %358 = tpu.iota {dimensions = array<i32: 0>} : vector<5x5xi32>
    %359 = tpu.iota {dimensions = array<i32: 1>} : vector<5x5xi32>
    %360 = arith.cmpi eq, %358, %359 : vector<5x5xi32>
    %361 = tpu.iota {dimensions = array<i32: 0>} : vector<5x1xi32>
    %362 = tpu.iota {dimensions = array<i32: 1>} : vector<1x5xi32>
    %363 = tpu.iota {dimensions = array<i32: 1>} : vector<1x8xi32>
    %364 = vector.extract_strided_slice %352 {offsets = [1, 0], sizes = [1, 5], strides = [1, 1]} : vector<8x5xf32> to vector<1x5xf32>
    %365 = vector.shape_cast %364 : vector<1x5xf32> to vector<1x5xf32>
    %366 = vector.broadcast %365 : vector<1x5xf32> to vector<5x5xf32>
    %cst_69 = arith.constant 0.000000e+00 : f32
    %367 = vector.broadcast %cst_69 : f32 to vector<5x5xf32>
    %368 = arith.select %360, %366, %367 : vector<5x5xi1>, vector<5x5xf32>
    %cst_70 = arith.constant dense<0.000000e+00> : vector<5xf32>
    %369 = vector.multi_reduction <add>, %368, %cst_70 [1] : vector<5x5xf32> to vector<5xf32>
    %370 = vector.shape_cast %369 : vector<5xf32> to vector<5x1xf32>
    %371 = vector.extract_strided_slice %352 {offsets = [3, 0], sizes = [1, 5], strides = [1, 1]} : vector<8x5xf32> to vector<1x5xf32>
    %372 = vector.shape_cast %371 : vector<1x5xf32> to vector<1x5xf32>
    %373 = vector.broadcast %372 : vector<1x5xf32> to vector<5x5xf32>
    %cst_71 = arith.constant 0.000000e+00 : f32
    %374 = vector.broadcast %cst_71 : f32 to vector<5x5xf32>
    %375 = arith.select %360, %373, %374 : vector<5x5xi1>, vector<5x5xf32>
    %cst_72 = arith.constant dense<0.000000e+00> : vector<5xf32>
    %376 = vector.multi_reduction <add>, %375, %cst_72 [1] : vector<5x5xf32> to vector<5xf32>
    %377 = vector.shape_cast %376 : vector<5xf32> to vector<5x1xf32>
    %378 = vector.extract_strided_slice %352 {offsets = [5, 0], sizes = [1, 5], strides = [1, 1]} : vector<8x5xf32> to vector<1x5xf32>
    %379 = vector.shape_cast %378 : vector<1x5xf32> to vector<1x5xf32>
    %380 = vector.broadcast %379 : vector<1x5xf32> to vector<5x5xf32>
    %cst_73 = arith.constant 0.000000e+00 : f32
    %381 = vector.broadcast %cst_73 : f32 to vector<5x5xf32>
    %382 = arith.select %360, %380, %381 : vector<5x5xi1>, vector<5x5xf32>
    %cst_74 = arith.constant dense<0.000000e+00> : vector<5xf32>
    %383 = vector.multi_reduction <add>, %382, %cst_74 [1] : vector<5x5xf32> to vector<5xf32>
    %384 = vector.shape_cast %383 : vector<5xf32> to vector<5x1xf32>
    %385 = vector.extract_strided_slice %352 {offsets = [7, 0], sizes = [1, 5], strides = [1, 1]} : vector<8x5xf32> to vector<1x5xf32>
    %386 = vector.shape_cast %385 : vector<1x5xf32> to vector<1x5xf32>
    %387 = vector.broadcast %386 : vector<1x5xf32> to vector<5x5xf32>
    %cst_75 = arith.constant 0.000000e+00 : f32
    %388 = vector.broadcast %cst_75 : f32 to vector<5x5xf32>
    %389 = arith.select %360, %387, %388 : vector<5x5xi1>, vector<5x5xf32>
    %cst_76 = arith.constant dense<0.000000e+00> : vector<5xf32>
    %390 = vector.multi_reduction <add>, %389, %cst_76 [1] : vector<5x5xf32> to vector<5xf32>
    %391 = vector.shape_cast %390 : vector<5xf32> to vector<5x1xf32>
    %c3_i32_77 = arith.constant 3 : i32
    %392 = vector.broadcast %c3_i32_77 : i32 to vector<5x1xi32>
    %393 = arith.cmpi eq, %361, %392 : vector<5x1xi32>
    %cst_78 = arith.constant 0.000000e+00 : f32
    %cst_79 = arith.constant -1.000000e+04 : f32
    %394 = vector.broadcast %cst_78 : f32 to vector<5x1xf32>
    %395 = vector.broadcast %cst_79 : f32 to vector<5x1xf32>
    %396 = arith.select %393, %394, %395 : vector<5x1xi1>, vector<5x1xf32>
    %397 = vector.broadcast %396 : vector<5x1xf32> to vector<5x5xf32>
    %398 = arith.addf %357, %397 : vector<5x5xf32>
    %cst_80 = arith.constant dense<0xFF800000> : vector<5xf32>
    %399 = vector.multi_reduction <maximumf>, %398, %cst_80 [0] : vector<5x5xf32> to vector<5xf32>
    %400 = vector.shape_cast %399 : vector<5xf32> to vector<1x5xf32>
    %401 = vector.extract_strided_slice %352 {offsets = [0, 0], sizes = [1, 5], strides = [1, 1]} : vector<8x5xf32> to vector<1x5xf32>
    %402 = arith.addf %400, %401 : vector<1x5xf32>
    %403 = vector.broadcast %402 : vector<1x5xf32> to vector<5x5xf32>
    %404 = arith.addf %356, %403 : vector<5x5xf32>
    %cst_81 = arith.constant dense<0xFF800000> : vector<5xf32>
    %405 = vector.multi_reduction <maximumf>, %404, %cst_81 [1] : vector<5x5xf32> to vector<5xf32>
    %406 = vector.shape_cast %405 : vector<5xf32> to vector<5x1xf32>
    %407 = vector.broadcast %406 : vector<5x1xf32> to vector<5x5xf32>
    %408 = arith.cmpf oeq, %404, %407 : vector<5x5xf32>
    %c5_i32_82 = arith.constant 5 : i32
    %409 = vector.broadcast %c5_i32_82 : i32 to vector<5x5xi32>
    %410 = arith.select %408, %359, %409 : vector<5x5xi1>, vector<5x5xi32>
    %cst_83 = arith.constant dense<2147483647> : vector<5xi32>
    %411 = vector.multi_reduction <minsi>, %410, %cst_83 [1] : vector<5x5xi32> to vector<5xi32>
    %412 = vector.shape_cast %411 : vector<5xi32> to vector<5x1xi32>
    %413 = arith.addf %406, %370 : vector<5x1xf32>
    %414 = vector.broadcast %413 : vector<5x1xf32> to vector<5x5xf32>
    %415 = arith.addf %357, %414 : vector<5x5xf32>
    %cst_84 = arith.constant dense<0xFF800000> : vector<5xf32>
    %416 = vector.multi_reduction <maximumf>, %415, %cst_84 [0] : vector<5x5xf32> to vector<5xf32>
    %417 = vector.shape_cast %416 : vector<5xf32> to vector<1x5xf32>
    %418 = vector.broadcast %417 : vector<1x5xf32> to vector<5x5xf32>
    %419 = arith.cmpf oeq, %415, %418 : vector<5x5xf32>
    %c5_i32_85 = arith.constant 5 : i32
    %420 = vector.broadcast %c5_i32_85 : i32 to vector<5x5xi32>
    %421 = arith.select %419, %358, %420 : vector<5x5xi1>, vector<5x5xi32>
    %cst_86 = arith.constant dense<2147483647> : vector<5xi32>
    %422 = vector.multi_reduction <minsi>, %421, %cst_86 [0] : vector<5x5xi32> to vector<5xi32>
    %423 = vector.shape_cast %422 : vector<5xi32> to vector<1x5xi32>
    %424 = vector.extract_strided_slice %352 {offsets = [2, 0], sizes = [1, 5], strides = [1, 1]} : vector<8x5xf32> to vector<1x5xf32>
    %425 = arith.addf %417, %424 : vector<1x5xf32>
    %426 = vector.broadcast %425 : vector<1x5xf32> to vector<5x5xf32>
    %427 = arith.addf %356, %426 : vector<5x5xf32>
    %cst_87 = arith.constant dense<0xFF800000> : vector<5xf32>
    %428 = vector.multi_reduction <maximumf>, %427, %cst_87 [1] : vector<5x5xf32> to vector<5xf32>
    %429 = vector.shape_cast %428 : vector<5xf32> to vector<5x1xf32>
    %430 = vector.broadcast %429 : vector<5x1xf32> to vector<5x5xf32>
    %431 = arith.cmpf oeq, %427, %430 : vector<5x5xf32>
    %c5_i32_88 = arith.constant 5 : i32
    %432 = vector.broadcast %c5_i32_88 : i32 to vector<5x5xi32>
    %433 = arith.select %431, %359, %432 : vector<5x5xi1>, vector<5x5xi32>
    %cst_89 = arith.constant dense<2147483647> : vector<5xi32>
    %434 = vector.multi_reduction <minsi>, %433, %cst_89 [1] : vector<5x5xi32> to vector<5xi32>
    %435 = vector.shape_cast %434 : vector<5xi32> to vector<5x1xi32>
    %436 = arith.addf %429, %377 : vector<5x1xf32>
    %437 = vector.broadcast %436 : vector<5x1xf32> to vector<5x5xf32>
    %438 = arith.addf %357, %437 : vector<5x5xf32>
    %cst_90 = arith.constant dense<0xFF800000> : vector<5xf32>
    %439 = vector.multi_reduction <maximumf>, %438, %cst_90 [0] : vector<5x5xf32> to vector<5xf32>
    %440 = vector.shape_cast %439 : vector<5xf32> to vector<1x5xf32>
    %441 = vector.broadcast %440 : vector<1x5xf32> to vector<5x5xf32>
    %442 = arith.cmpf oeq, %438, %441 : vector<5x5xf32>
    %c5_i32_91 = arith.constant 5 : i32
    %443 = vector.broadcast %c5_i32_91 : i32 to vector<5x5xi32>
    %444 = arith.select %442, %358, %443 : vector<5x5xi1>, vector<5x5xi32>
    %cst_92 = arith.constant dense<2147483647> : vector<5xi32>
    %445 = vector.multi_reduction <minsi>, %444, %cst_92 [0] : vector<5x5xi32> to vector<5xi32>
    %446 = vector.shape_cast %445 : vector<5xi32> to vector<1x5xi32>
    %447 = vector.extract_strided_slice %352 {offsets = [4, 0], sizes = [1, 5], strides = [1, 1]} : vector<8x5xf32> to vector<1x5xf32>
    %448 = arith.addf %440, %447 : vector<1x5xf32>
    %449 = vector.broadcast %448 : vector<1x5xf32> to vector<5x5xf32>
    %450 = arith.addf %356, %449 : vector<5x5xf32>
    %cst_93 = arith.constant dense<0xFF800000> : vector<5xf32>
    %451 = vector.multi_reduction <maximumf>, %450, %cst_93 [1] : vector<5x5xf32> to vector<5xf32>
    %452 = vector.shape_cast %451 : vector<5xf32> to vector<5x1xf32>
    %453 = vector.broadcast %452 : vector<5x1xf32> to vector<5x5xf32>
    %454 = arith.cmpf oeq, %450, %453 : vector<5x5xf32>
    %c5_i32_94 = arith.constant 5 : i32
    %455 = vector.broadcast %c5_i32_94 : i32 to vector<5x5xi32>
    %456 = arith.select %454, %359, %455 : vector<5x5xi1>, vector<5x5xi32>
    %cst_95 = arith.constant dense<2147483647> : vector<5xi32>
    %457 = vector.multi_reduction <minsi>, %456, %cst_95 [1] : vector<5x5xi32> to vector<5xi32>
    %458 = vector.shape_cast %457 : vector<5xi32> to vector<5x1xi32>
    %459 = arith.addf %452, %384 : vector<5x1xf32>
    %460 = vector.broadcast %459 : vector<5x1xf32> to vector<5x5xf32>
    %461 = arith.addf %357, %460 : vector<5x5xf32>
    %cst_96 = arith.constant dense<0xFF800000> : vector<5xf32>
    %462 = vector.multi_reduction <maximumf>, %461, %cst_96 [0] : vector<5x5xf32> to vector<5xf32>
    %463 = vector.shape_cast %462 : vector<5xf32> to vector<1x5xf32>
    %464 = vector.broadcast %463 : vector<1x5xf32> to vector<5x5xf32>
    %465 = arith.cmpf oeq, %461, %464 : vector<5x5xf32>
    %c5_i32_97 = arith.constant 5 : i32
    %466 = vector.broadcast %c5_i32_97 : i32 to vector<5x5xi32>
    %467 = arith.select %465, %358, %466 : vector<5x5xi1>, vector<5x5xi32>
    %cst_98 = arith.constant dense<2147483647> : vector<5xi32>
    %468 = vector.multi_reduction <minsi>, %467, %cst_98 [0] : vector<5x5xi32> to vector<5xi32>
    %469 = vector.shape_cast %468 : vector<5xi32> to vector<1x5xi32>
    %470 = vector.extract_strided_slice %352 {offsets = [6, 0], sizes = [1, 5], strides = [1, 1]} : vector<8x5xf32> to vector<1x5xf32>
    %471 = arith.addf %463, %470 : vector<1x5xf32>
    %472 = vector.broadcast %471 : vector<1x5xf32> to vector<5x5xf32>
    %473 = arith.addf %356, %472 : vector<5x5xf32>
    %cst_99 = arith.constant dense<0xFF800000> : vector<5xf32>
    %474 = vector.multi_reduction <maximumf>, %473, %cst_99 [1] : vector<5x5xf32> to vector<5xf32>
    %475 = vector.shape_cast %474 : vector<5xf32> to vector<5x1xf32>
    %476 = vector.broadcast %475 : vector<5x1xf32> to vector<5x5xf32>
    %477 = arith.cmpf oeq, %473, %476 : vector<5x5xf32>
    %c5_i32_100 = arith.constant 5 : i32
    %478 = vector.broadcast %c5_i32_100 : i32 to vector<5x5xi32>
    %479 = arith.select %477, %359, %478 : vector<5x5xi1>, vector<5x5xi32>
    %cst_101 = arith.constant dense<2147483647> : vector<5xi32>
    %480 = vector.multi_reduction <minsi>, %479, %cst_101 [1] : vector<5x5xi32> to vector<5xi32>
    %481 = vector.shape_cast %480 : vector<5xi32> to vector<5x1xi32>
    %482 = arith.addf %475, %391 : vector<5x1xf32>
    %483 = vector.extract_strided_slice %357 {offsets = [0, 4], sizes = [5, 1], strides = [1, 1]} : vector<5x5xf32> to vector<5x1xf32>
    %484 = arith.addf %482, %483 : vector<5x1xf32>
    %485 = vector.shape_cast %484 : vector<5x1xf32> to vector<1x5x1xf32>
    %cst_102 = arith.constant dense<0xFF800000> : vector<1xf32>
    %486 = vector.multi_reduction <maximumf>, %485, %cst_102 [1, 2] : vector<1x5x1xf32> to vector<1xf32>
    %487 = vector.shape_cast %486 : vector<1xf32> to vector<1x1x1xf32>
    %488 = vector.extract %487[0, 0, 0] : f32 from vector<1x1x1xf32>
    %489 = vector.broadcast %488 : f32 to vector<5x1xf32>
    %490 = arith.cmpf oeq, %484, %489 : vector<5x1xf32>
    %c5_i32_103 = arith.constant 5 : i32
    %491 = vector.broadcast %c5_i32_103 : i32 to vector<5x1xi32>
    %492 = arith.select %490, %361, %491 : vector<5x1xi1>, vector<5x1xi32>
    %493 = vector.shape_cast %492 : vector<5x1xi32> to vector<1x5x1xi32>
    %cst_104 = arith.constant dense<2147483647> : vector<1xi32>
    %494 = vector.multi_reduction <minsi>, %493, %cst_104 [1, 2] : vector<1x5x1xi32> to vector<1xi32>
    %495 = vector.shape_cast %494 : vector<1xi32> to vector<1x1x1xi32>
    %496 = vector.extract %495[0, 0, 0] : i32 from vector<1x1x1xi32>
    %c7_i32_105 = arith.constant 7 : i32
    %497 = vector.broadcast %c7_i32_105 : i32 to vector<1x8xi32>
    %498 = arith.cmpi eq, %363, %497 : vector<1x8xi32>
    %c0_i32_106 = arith.constant 0 : i32
    %499 = vector.broadcast %496 : i32 to vector<1x8xi32>
    %500 = vector.broadcast %c0_i32_106 : i32 to vector<1x8xi32>
    %501 = arith.select %498, %499, %500 : vector<1x8xi1>, vector<1x8xi32>
    %502 = vector.broadcast %496 : i32 to vector<5x1xi32>
    %503 = arith.cmpi eq, %361, %502 : vector<5x1xi32>
    %c0_i32_107 = arith.constant 0 : i32
    %504 = vector.broadcast %c0_i32_107 : i32 to vector<5x1xi32>
    %505 = arith.select %503, %481, %504 : vector<5x1xi1>, vector<5x1xi32>
    %506 = vector.shape_cast %505 : vector<5x1xi32> to vector<1x5x1xi32>
    %cst_108 = arith.constant dense<0> : vector<1xi32>
    %507 = vector.multi_reduction <add>, %506, %cst_108 [1, 2] : vector<1x5x1xi32> to vector<1xi32>
    %508 = vector.shape_cast %507 : vector<1xi32> to vector<1x1x1xi32>
    %509 = vector.extract %508[0, 0, 0] : i32 from vector<1x1x1xi32>
    %c6_i32_109 = arith.constant 6 : i32
    %510 = vector.broadcast %c6_i32_109 : i32 to vector<1x8xi32>
    %511 = arith.cmpi eq, %363, %510 : vector<1x8xi32>
    %512 = vector.broadcast %509 : i32 to vector<1x8xi32>
    %513 = arith.select %511, %512, %501 : vector<1x8xi1>, vector<1x8xi32>
    %514 = vector.broadcast %509 : i32 to vector<1x5xi32>
    %515 = arith.cmpi eq, %362, %514 : vector<1x5xi32>
    %c0_i32_110 = arith.constant 0 : i32
    %516 = vector.broadcast %c0_i32_110 : i32 to vector<1x5xi32>
    %517 = arith.select %515, %469, %516 : vector<1x5xi1>, vector<1x5xi32>
    %518 = vector.shape_cast %517 : vector<1x5xi32> to vector<1x1x5xi32>
    %cst_111 = arith.constant dense<0> : vector<1xi32>
    %519 = vector.multi_reduction <add>, %518, %cst_111 [1, 2] : vector<1x1x5xi32> to vector<1xi32>
    %520 = vector.shape_cast %519 : vector<1xi32> to vector<1x1x1xi32>
    %521 = vector.extract %520[0, 0, 0] : i32 from vector<1x1x1xi32>
    %c5_i32_112 = arith.constant 5 : i32
    %522 = vector.broadcast %c5_i32_112 : i32 to vector<1x8xi32>
    %523 = arith.cmpi eq, %363, %522 : vector<1x8xi32>
    %524 = vector.broadcast %521 : i32 to vector<1x8xi32>
    %525 = arith.select %523, %524, %513 : vector<1x8xi1>, vector<1x8xi32>
    %526 = vector.broadcast %521 : i32 to vector<5x1xi32>
    %527 = arith.cmpi eq, %361, %526 : vector<5x1xi32>
    %c0_i32_113 = arith.constant 0 : i32
    %528 = vector.broadcast %c0_i32_113 : i32 to vector<5x1xi32>
    %529 = arith.select %527, %458, %528 : vector<5x1xi1>, vector<5x1xi32>
    %530 = vector.shape_cast %529 : vector<5x1xi32> to vector<1x5x1xi32>
    %cst_114 = arith.constant dense<0> : vector<1xi32>
    %531 = vector.multi_reduction <add>, %530, %cst_114 [1, 2] : vector<1x5x1xi32> to vector<1xi32>
    %532 = vector.shape_cast %531 : vector<1xi32> to vector<1x1x1xi32>
    %533 = vector.extract %532[0, 0, 0] : i32 from vector<1x1x1xi32>
    %c4_i32_115 = arith.constant 4 : i32
    %534 = vector.broadcast %c4_i32_115 : i32 to vector<1x8xi32>
    %535 = arith.cmpi eq, %363, %534 : vector<1x8xi32>
    %536 = vector.broadcast %533 : i32 to vector<1x8xi32>
    %537 = arith.select %535, %536, %525 : vector<1x8xi1>, vector<1x8xi32>
    %538 = vector.broadcast %533 : i32 to vector<1x5xi32>
    %539 = arith.cmpi eq, %362, %538 : vector<1x5xi32>
    %c0_i32_116 = arith.constant 0 : i32
    %540 = vector.broadcast %c0_i32_116 : i32 to vector<1x5xi32>
    %541 = arith.select %539, %446, %540 : vector<1x5xi1>, vector<1x5xi32>
    %542 = vector.shape_cast %541 : vector<1x5xi32> to vector<1x1x5xi32>
    %cst_117 = arith.constant dense<0> : vector<1xi32>
    %543 = vector.multi_reduction <add>, %542, %cst_117 [1, 2] : vector<1x1x5xi32> to vector<1xi32>
    %544 = vector.shape_cast %543 : vector<1xi32> to vector<1x1x1xi32>
    %545 = vector.extract %544[0, 0, 0] : i32 from vector<1x1x1xi32>
    %c3_i32_118 = arith.constant 3 : i32
    %546 = vector.broadcast %c3_i32_118 : i32 to vector<1x8xi32>
    %547 = arith.cmpi eq, %363, %546 : vector<1x8xi32>
    %548 = vector.broadcast %545 : i32 to vector<1x8xi32>
    %549 = arith.select %547, %548, %537 : vector<1x8xi1>, vector<1x8xi32>
    %550 = vector.broadcast %545 : i32 to vector<5x1xi32>
    %551 = arith.cmpi eq, %361, %550 : vector<5x1xi32>
    %c0_i32_119 = arith.constant 0 : i32
    %552 = vector.broadcast %c0_i32_119 : i32 to vector<5x1xi32>
    %553 = arith.select %551, %435, %552 : vector<5x1xi1>, vector<5x1xi32>
    %554 = vector.shape_cast %553 : vector<5x1xi32> to vector<1x5x1xi32>
    %cst_120 = arith.constant dense<0> : vector<1xi32>
    %555 = vector.multi_reduction <add>, %554, %cst_120 [1, 2] : vector<1x5x1xi32> to vector<1xi32>
    %556 = vector.shape_cast %555 : vector<1xi32> to vector<1x1x1xi32>
    %557 = vector.extract %556[0, 0, 0] : i32 from vector<1x1x1xi32>
    %c2_i32_121 = arith.constant 2 : i32
    %558 = vector.broadcast %c2_i32_121 : i32 to vector<1x8xi32>
    %559 = arith.cmpi eq, %363, %558 : vector<1x8xi32>
    %560 = vector.broadcast %557 : i32 to vector<1x8xi32>
    %561 = arith.select %559, %560, %549 : vector<1x8xi1>, vector<1x8xi32>
    %562 = vector.broadcast %557 : i32 to vector<1x5xi32>
    %563 = arith.cmpi eq, %362, %562 : vector<1x5xi32>
    %c0_i32_122 = arith.constant 0 : i32
    %564 = vector.broadcast %c0_i32_122 : i32 to vector<1x5xi32>
    %565 = arith.select %563, %423, %564 : vector<1x5xi1>, vector<1x5xi32>
    %566 = vector.shape_cast %565 : vector<1x5xi32> to vector<1x1x5xi32>
    %cst_123 = arith.constant dense<0> : vector<1xi32>
    %567 = vector.multi_reduction <add>, %566, %cst_123 [1, 2] : vector<1x1x5xi32> to vector<1xi32>
    %568 = vector.shape_cast %567 : vector<1xi32> to vector<1x1x1xi32>
    %569 = vector.extract %568[0, 0, 0] : i32 from vector<1x1x1xi32>
    %c1_i32_124 = arith.constant 1 : i32
    %570 = vector.broadcast %c1_i32_124 : i32 to vector<1x8xi32>
    %571 = arith.cmpi eq, %363, %570 : vector<1x8xi32>
    %572 = vector.broadcast %569 : i32 to vector<1x8xi32>
    %573 = arith.select %571, %572, %561 : vector<1x8xi1>, vector<1x8xi32>
    %574 = vector.broadcast %569 : i32 to vector<5x1xi32>
    %575 = arith.cmpi eq, %361, %574 : vector<5x1xi32>
    %c0_i32_125 = arith.constant 0 : i32
    %576 = vector.broadcast %c0_i32_125 : i32 to vector<5x1xi32>
    %577 = arith.select %575, %412, %576 : vector<5x1xi1>, vector<5x1xi32>
    %578 = vector.shape_cast %577 : vector<5x1xi32> to vector<1x5x1xi32>
    %cst_126 = arith.constant dense<0> : vector<1xi32>
    %579 = vector.multi_reduction <add>, %578, %cst_126 [1, 2] : vector<1x5x1xi32> to vector<1xi32>
    %580 = vector.shape_cast %579 : vector<1xi32> to vector<1x1x1xi32>
    %581 = vector.extract %580[0, 0, 0] : i32 from vector<1x1x1xi32>
    %c0_i32_127 = arith.constant 0 : i32
    %582 = vector.broadcast %c0_i32_127 : i32 to vector<1x8xi32>
    %583 = arith.cmpi eq, %363, %582 : vector<1x8xi32>
    %584 = vector.broadcast %581 : i32 to vector<1x8xi32>
    %585 = arith.select %583, %584, %573 : vector<1x8xi1>, vector<1x8xi32>
    %586 = vector.broadcast %488 : f32 to vector<1x1xf32>
    %c0_128 = arith.constant 0 : index
    %c0_129 = arith.constant 0 : index
    %c0_130 = arith.constant 0 : index
    %587 = vector.load %arg4[%c0_128, %c0_129, %c0_130] : memref<1x1x1xf32, #tpu.memory_space<vmem>>, vector<1x1x1xf32>
    %588 = vector.shape_cast %587 : vector<1x1x1xf32> to vector<1x1xf32>
    %589 = vector.shape_cast %586 : vector<1x1xf32> to vector<1x1x1xf32>
    tpu.vector_store %arg4[%c0_128, %c0_129, %c0_130], %589 {strides = array<i32>} : memref<1x1x1xf32, #tpu.memory_space<vmem>>, vector<1x1x1xf32>,
    %c0_131 = arith.constant 0 : index
    %c0_132 = arith.constant 0 : index
    %c0_133 = arith.constant 0 : index
    %590 = vector.load %arg5[%c0_131, %c0_132, %c0_133] : memref<1x1x8xi32, #tpu.memory_space<vmem>>, vector<1x1x8xi32>
    %591 = vector.shape_cast %590 : vector<1x1x8xi32> to vector<1x8xi32>
    %592 = vector.shape_cast %585 : vector<1x8xi32> to vector<1x1x8xi32>
    tpu.vector_store %arg5[%c0_131, %c0_132, %c0_133], %592 {strides = array<i32>} : memref<1x1x8xi32, #tpu.memory_space<vmem>>, vector<1x1x8xi32>,
    return
  }
  func.func @transform_0(%arg0: i32, %arg1: memref<4x8xi32, #tpu.memory_space<smem>>) -> (i32, i32) {
    %c0_i32 = arith.constant 0 : i32
    %c0_i32_0 = arith.constant 0 : i32
    %c0_i32_1 = arith.constant 0 : i32
    return %c0_i32, %c0_i32_0 : i32, i32
  }
  func.func @transform_1(%arg0: i32, %arg1: memref<4x8xi32, #tpu.memory_space<smem>>) -> (i32, i32) {
    %c0_i32 = arith.constant 0 : i32
    %c0_i32_0 = arith.constant 0 : i32
    %c0_i32_1 = arith.constant 0 : i32
    return %c0_i32, %c0_i32_0 : i32, i32
  }
  func.func @transform_2(%arg0: i32, %arg1: memref<4x8xi32, #tpu.memory_space<smem>>) -> (i32, i32, i32) {
    %c0_i32 = arith.constant 0 : i32
    %c0_i32_0 = arith.constant 0 : i32
    %c0_i32_1 = arith.constant 0 : i32
    return %arg0, %c0_i32, %c0_i32_0 : i32, i32, i32
  }
  func.func @transform_3(%arg0: i32, %arg1: memref<4x8xi32, #tpu.memory_space<smem>>) -> (i32, i32, i32) {
    %c0_i32 = arith.constant 0 : i32
    %c0_i32_0 = arith.constant 0 : i32
    %c0_i32_1 = arith.constant 0 : i32
    return %arg0, %c0_i32, %c0_i32_0 : i32, i32, i32
  }
  func.func @transform_4(%arg0: i32, %arg1: memref<4x8xi32, #tpu.memory_space<smem>>) -> (i32, i32, i32) {
    %c0_i32 = arith.constant 0 : i32
    %c0_i32_0 = arith.constant 0 : i32
    %c0_i32_1 = arith.constant 0 : i32
    return %arg0, %c0_i32, %c0_i32_0 : i32, i32, i32
  }
}

</mosaic_0001>

<bundles_post_ra>
// kernel: tpu_custom_call.1
= control target key start
LH: loop header
LB: loop body
LE: loop exit
PB: predicated region body
PF: predicated region fallthrough
CT: control target
= control target key end

     0   :  { %s2910_s0 = inlined_call_operand.hbm [shape: s32[4,8], index: 0, kind: input, shape index: {}]   ;;  %s2911_s1 = inlined_call_operand.hbm [shape: bf16[112,128], index: 1, kind: input, shape index: {}]   ;;  %s2912_s2 = inlined_call_operand.hbm [shape: f32[24,128], index: 2, kind: input, shape index: {}]   ;;  %s2913_s3 = inlined_call_operand.vmem [shape: f32[4,1,1], index: 3, kind: output, shape index: {0}]   ;;  %s2914_s4 = inlined_call_operand.hbm [shape: s32[4,1,8], index: 4, kind: output, shape index: {1}]   ;;  %s2915_s5 = inlined_call_operand.vmem [shape: f32[4,8,5], index: 5, kind: output, shape index: {2}]  }
   0x1   :  { %s2059_s20 = scalar_lea.hbm %s2910_s0, 64 }
   0x2   :  { %p2060_p0 = scmp.ne.s32.totalorder %s2910_s0, %s2059_s20  ;;  %p2063_p1 = scmp.lt.u32.totalorder %s2059_s20, %s2910_s0 }
   0x4   :  { %p2065_p2 = pnand %p2063_p1, %p2060_p0 }
   0x6   :  { %2068 = shalt.err (!%p2065_p2)  }
   0x7   :  { %s2199_s25 = smov [#allocation3]  }
   0x8   :  { %12 = dma.hbm_to_smem %s2910_s0, 64, %s2199_s25, [#allocation2] }
   0x9   :  { %2169 = dma.done.wait [#allocation2], 64 }
   0xa   :  { %2170 = vsyncadd [#allocation2], 4294967232 }
   0xb   :  { %14 = sfence }
   0xc   :  { %15 = vsyncpa [#allocation5], 0 }
   0xd   :  { %16 = vsyncpa [#allocation8], 0 }
   0xe   :  { %17 = vsyncpa [#allocation6], 0 }
   0xf   :  { %19 = vsyncpa [#allocation6 + $0x1], 0  ;;  %s2255_s28 = smov 0   ;;  %s2257_s29 = smov 0  }
  0x10   :  { %s2259_s30 = smov 0   ;;  %s2261_s6 = smov 0  }
  0x11 LB: > { %s2276_s0 = sadd.s32 4294967295, %s2197_s6   ;;  %s1740_s7 = sadd.s32 4294967294, %s2197_s6   ;;  %s2197_s6 = sphi %s2261_s6, %s2935_s6   ;;  %s2193_s30 = sphi %s2259_s30, %s2934_s30   ;;  %s2189_s29 = sphi %s2257_s29, %s2933_s29   ;;  %s2185_s28 = sphi %s2255_s28, %s2932_s28  }
  0x12   : > { %s2280_s8 = sadd.s32 1, %s2197_s6   ;;  %s100_s9 = sadd.s32 1, %s2193_s30 }
  0x13   : > { %s97_s10 = ssub.s32 %s2197_s6, %s2280_s8  ;;  %p110_p3 = scmp.ne.s32.totalorder %s2193_s30, %s2189_s29 }
  0x14   : > { %p98_p4 = scmp.eq.s32.totalorder %s97_s10, 0  ;;  %p111_p5 = scmp.eq.s32.totalorder %s2276_s0, 3 }
  0x15   : > { %p116_p6 = scmp.ne.s32.totalorder %s2189_s29, %s2185_s28  ;;  %p117_p7 = scmp.eq.s32.totalorder %s1740_s7, 3 }
  0x16   : > { %s2291_s11 = scalar_select %p98_p4, %s2193_s30, %s100_s9  }
  0x17   : > { %p2293_p8 = por %p111_p5, %p110_p3  ;;  %p2297_p9 = por %p117_p7, %p116_p6 }
  0x18   : > { %p1741_p10 = scmp.ge.s32.totalorder %s2197_s6, 1  ;;  %p150_p11 = scmp.lt.s32.totalorder %s2197_s6, 5 }
  0x19   : > { %s2919_s12 = scalar_select %p2293_p8, 1, 0 }
  0x1a   : > { %s2920_s13 = scalar_select %p2297_p9, 1, 0 }
  0x1b   : > { %p2916_p12 = scmp.eq.s32.totalorder %s2276_s0, 0  ;;  %p2304_p13 = pnand %p1741_p10, %p150_p11 }
  0x1c   : > { %s2200_s15 = smov [#allocation4]   ;;  %s2201_s18 = smov [#allocation7]  }
  0x1d   : > { %s2921_s14 = scalar_select %p2304_p13, 1, 0 }
  0x1e   : > { %s162_s16 = sshll.u32 %s2200_s15, 4  ;;  %p1927_p0 = pneg %p2304_p13  ;;  %s163_s16 = int_to_ptr.vmem [resolvable:$true] %s162_s16 }
  0x1f   : > { %s175_s19 = sshll.u32 %s2201_s18, 4  ;;  %s2069_s22 = scalar_lea.hbm %s2911_s1, 896  ;;  %s2316_s19 = int_to_ptr.vmem [resolvable:$true] %s175_s19 }
  0x20   : > { %p2312_p1 = pnand %p2916_p12, %p1927_p0  ;;  %p2070_p2 = scmp.ne.s32.totalorder %s2911_s1, %s2069_s22 }
  0x21   : > { %p2076_p6 = scmp.lt.u32.totalorder %s2069_s22, %s2911_s1 }
  0x22   : > { %p2071_p3 = pneg %p2312_p1 }
  0x24   : > { %p2072_p4 = pnand %p2071_p3, %p2070_p2 }
  0x26   : > { %p2073_p5 = pneg %p2072_p4 }
  0x28   : > { %p2078_p7 = pnand %p2076_p6, %p2073_p5 }
  0x2a   : > { %2081 = shalt.err (!%p2078_p7)
}
  0x2b   : > { %s2082_s27 = scalar_lea.vmem %s163_s16, 896  ;;  %p2090_p12 = scmp.lt.s32.totalorder %s163_s16, %s163_s16 }
  0x2c   : > { %p2083_p10 = scmp.ne.s32.totalorder %s163_s16, %s2082_s27  ;;  %p2091_p9 = scmp.lt.s32.totalorder %s2082_s27, %s2082_s27 }
  0x2e   : > { %p2085_p11 = pnand %p2083_p10, %p2071_p3  ;;  %p2092_p8 = por %p2091_p9, %p2090_p12 }
  0x30   : > { %p2086_p0 = pneg %p2085_p11 }
  0x32   : > { %p2093_p13 = pnand %p2092_p8, %p2086_p0 }
  0x34   : > { %2096 = shalt.err (!%p2093_p13)
}
  0x35   : > { %s2202_s7 = smov 64   ;;  %s2203_s9 = smov 4  }
  0x36   : > { %1930 = dma.hbm_to_vmem [thread:$0]  (!%p2312_p1), %s2911_s1, 896, %s163_s16, [#allocation5], %s2202_s7, %s2202_s7, %s2203_s9  }
  0x37   : > { %s2097_s21 = scalar_lea.hbm %s2912_s2, 384 }
  0x38   : > { %p2098_p2 = scmp.ne.s32.totalorder %s2912_s2, %s2097_s21  ;;  %p2104_p12 = scmp.lt.u32.totalorder %s2097_s21, %s2912_s2 }
  0x3a   : > { %p2100_p8 = pnand %p2098_p2, %p2071_p3 }
  0x3c   : > { %p2101_p9 = pneg %p2100_p8 }
  0x3e   : > { %p2106_p13 = pnand %p2104_p12, %p2101_p9 }
  0x40   : > { %2109 = shalt.err (!%p2106_p13)
}
  0x41   : > { %s2110_s16 = scalar_lea.vmem %s2316_s19, 384  ;;  %p2118_p7 = scmp.lt.s32.totalorder %s2316_s19, %s2316_s19 }
  0x42   : > { %p2111_p4 = scmp.ne.s32.totalorder %s2316_s19, %s2110_s16  ;;  %p2119_p10 = scmp.lt.s32.totalorder %s2110_s16, %s2110_s16 }
  0x44   : > { %p2113_p5 = pnand %p2111_p4, %p2071_p3  ;;  %p2120_p11 = por %p2119_p10, %p2118_p7 }
  0x46   : > { %p2114_p6 = pneg %p2113_p5 }
  0x48   : > { %p2121_p0 = pnand %p2120_p11, %p2114_p6 }
  0x4a   : > { %2124 = shalt.err (!%p2121_p0)
}
  0x4b   : > { %s2204_s26 = smov 128   ;;  %s2205_s27 = smov 8  }
  0x4c   : > { %1933 = dma.hbm_to_vmem [thread:$0]  (!%p2312_p1), %s2912_s2, 384, %s2316_s19, [#allocation8], %s2204_s26, %s2204_s26, %s2205_s27  }
  0x4d   : > { %p2923_p2 = scmp.ne.s32.totalorder %s2921_s14, 0 }
  0x4e   : > { %p2924_p3 = scmp.eq.s32.totalorder (!%p2923_p2), %s2276_s0, 0 }
  0x4f   : > { %191 = sbr.rel (%p2923_p2) target bundleno = 8326 (0x2086), region = 28 }
  0x56   : > { %2172 = dma.done.wait (%p2924_p3), [#allocation5], 896   ;;  %p2925_p8 = pmov %p2924_p3 }
  0x57   : > { %p2926_p9 = pmov %p2924_p3 }
  0x58   : > { %2174 = vsyncadd (%p2925_p8), [#allocation5], 4294966400 }
  0x59   : > { %2176 = dma.done.wait (%p2926_p9), [#allocation8], 384   ;;  %p2927_p12 = pmov %p2924_p3 }
  0x5a   : > { %v230_v0 = vlaneseq  ;;  %s2376_s17 = sshll.u32 %s2276_s0, 7  ;;  %v2206_v1 = vmov 0.0   ;;  %vm2207_vm0 = vmmov 0   ;;  %vm294_vm1 = vcmask 1041408   ;;  %v1988_v3 = vld [vmem:[#allocation4 + $0x28] sm:$0xff]   ;;  %v1990_v10 = vld [vmem:[#allocation4] sm:$0xff]  }
  0x5b   : > { %2178 = vsyncadd (%p2927_p12), [#allocation8], 4294966912  ;;  %1813 = vmatprep.subr.bf16.mxu0 %v2206_v1  ;;  %1817 = vmatprep.mubr.msk.bf16.mxu0 %vm2207_vm0, %v2206_v1  ;;  %s234_s14 = sld [smem:[#allocation3 + %s2376_s17]]  ;;  %s238_s19 = sadd.s32 1, %s2376_s17  ;;  %vm290_vm11 = vcmask 162816   ;;  %v2431_v26 = vld [vmem:[#allocation4 + $0x8] sm:$0xff]  }
  0x5c   : > { %v2383_v2 = vshrl.u32 %v230_v0, 7  ;;  %s239_s10 = sld [smem:[#allocation3 + %s238_s19]]  ;;  %s243_s15 = sadd.s32 2, %s2376_s17  ;;  %1821 = vmatprep.subr.bf16.mxu1 %v2206_v1  ;;  %1823 = vmatprep.mubr.msk.bf16.mxu1 %vm2207_vm0, %v2206_v1  ;;  %v1989_v5 = vld [vmem:[#allocation4 + $0x30] ss:$0 sps:$4 sm:$0x33]  }
  0x5d   : > { %s244_s18 = sld [smem:[#allocation3 + %s243_s15]]  ;;  %s248_s20 = sadd.s32 3, %s2376_s17  ;;  %1814 = vmatpush3.bf16.msra.mxu0 %v1988_v3  ;;  %v296_v11 = vsel %vm294_vm1, %v1989_v5, 0  ;;  %1822 = vmatpush3.bf16.msra.mxu1 %v1990_v10  ;;  %v2422_v21 = vand.u32 127, %v230_v0  ;;  %v2435_v27 = vld [vmem:[#allocation4 + $0x10] sm:$0xff]   ;;  %vm356_vm12 = vcmask 130048  }
  0x5e   : > { %s2390_s21 = sld [smem:[#allocation3 + %s248_s20]]  ;;  %s253_s22 = sadd.s32 4, %s2376_s17  ;;  %vm232_vm2 = vcmp.eq.s32.totalorder %v2383_v2, 0  ;;  %vm237_vm3 = vcmp.eq.s32.totalorder %v2383_v2, 1  ;;  %vm242_vm4 = vcmp.eq.s32.totalorder %v2383_v2, 2  ;;  %vm247_vm5 = vcmp.eq.s32.totalorder %v2383_v2, 3  ;;  %1815 = vmatprep.subr.bf16.mxu0 %v2206_v1  ;;  %1827 = vmatprep.subr.bf16.mxu1 %v2206_v1 }
  0x5f   : > { %s254_s23 = sld [smem:[#allocation3 + %s253_s22]]  ;;  %s258_s24 = sadd.s32 5, %s2376_s17  ;;  %vm252_vm6 = vcmp.eq.s32.totalorder %v2383_v2, 4  ;;  %vm257_vm7 = vcmp.eq.s32.totalorder %v2383_v2, 5  ;;  %vm262_vm8 = vcmp.eq.s32.totalorder %v2383_v2, 6  ;;  %vm267_vm9 = vcmp.eq.s32.totalorder %v2383_v2, 7 }
  0x60   : > { %s259_s25 = sld [smem:[#allocation3 + %s258_s24]]  ;;  %s263_s16 = sadd.s32 6, %s2376_s17  ;;  %v400_v33 = vld [vmem:[#allocation7 + $0x1] sm:$0x1]  ;;  %vm433_vm13 = vcmask 261120   ;;  %v406_v36 = vand.u32 31, %v2422_v21 }
  0x61   : > { %v235_v4 = vstv %s234_s14  ;;  %s264_s26 = sld [smem:[#allocation3 + %s263_s16]]  ;;  %s268_s27 = sadd.s32 7, %s2376_s17  ;;  %1816 = vmatpush3.bf16.msra.mxu0 %v296_v11  ;;  %v420_v34 = vpack.c.bf16 %v400_v33, %v400_v33  ;;  %v1753_v35 = vld [vmem:[#allocation7] ss:$0 sm:$0xff]  ;;  %v401_v56 = vld [vmem:[#allocation7 + $0x2] sm:$0x1] }
  0x62   : > { %v236_v6 = vsel %vm232_vm2, %v235_v4, 0  ;;  %v240_v7 = vstv %s239_s10  ;;  %s269_s7 = sld [smem:[#allocation3 + %s268_s27]]  ;;  %1835 = vmatprep.subr.bf16.mxu0 %v2206_v1  ;;  %vm414_vm14 = vcmp.lt.s32.totalorder %v406_v36, 16  ;;  %s2208_s9 = smov 64   ;;  %vm415_vm15 = vcmp.lt.s32.totalorder %v2422_v21, 16 }
  0x63   : > { %v241_v8 = vsel %vm237_vm3, %v240_v7, %v236_v6  ;;  %v245_v9 = vstv %s244_s18  ;;  %s2209_s17 = smov 32   ;;  %vm2210_vm1 = vmmov 1   ;;  %p222_p1 = scmp.lt.s32.totalorder %s2276_s0, 3 }
  0x64   : > { %v246_v12 = vsel %vm242_vm4, %v245_v9, %v241_v8  ;;  %v250_v13 = vstv %s2390_s21  ;;  %p2930_p4 = scmp.ne.s32.totalorder %s2919_s12, 0 }
  0x65   : > { %v251_v14 = vsel %vm247_vm5, %v250_v13, %v246_v12  ;;  %v255_v15 = vstv %s254_s23  ;;  %s2682_s14 = scalar_select %p222_p1, %s2276_s0, 3 }
  0x66   : > { %v256_v16 = vsel %vm252_vm6, %v255_v15, %v251_v14  ;;  %v260_v17 = vstv %s259_s25 }
  0x67   : > { %v261_v18 = vsel %vm257_vm7, %v260_v17, %v256_v16  ;;  %v265_v19 = vstv %s264_s26  ;;  %s1747_s19 = sshll.u32 %s2682_s14, 3  ;;  %s224_s22 = scalar_lea.vmem %s2913_s3, %s2682_s14 }
  0x68   : > { %v266_v20 = vsel %vm262_vm8, %v265_v19, %v261_v18  ;;  %v270_v22 = vstv %s269_s7  ;;  %s228_s18 = scalar_lea.vmem %s2915_s5, %s1747_s19  ;;  %s1778_s14 = sshll.u32 %s2276_s0, 4 }
  0x69   : > { %v271_v23 = vsel %vm267_vm9, %v270_v22, %v266_v20  ;;  %s2868_s21 = scalar_lea.hbm %s2914_s4, %s1778_s14 }
  0x6a   : > { %vm274_vm10 = vcmp.eq.s32.totalorder %v2422_v21, %v271_v23 }
  0x6b   : > { %v1749_v24 = vsel %vm274_vm10, 1.0, %v2206_v1  ;;  %vm2609_vm10 = vmxor %vm415_vm15, %vm2210_vm1 }
  0x6c   : > { %v277_v25 = vpack.c.bf16 %v1749_v24, %v1749_v24  ;;  %vm699_vm1 = vmand %vm242_vm4, %vm415_vm15 }
  0x6e   : > { %1818 = vmatmul.mubr.msk.bf16.vlgmr.msra.gmra.mrb[0].mxu0 %vm290_vm11, %v277_v25  ;;  %vm517_vm11 = vmand %vm267_vm9, %vm2609_vm10 }
  0x6f   : > { %1839 = vmatprep.mubr.msk.bf16.mxu0 %vm2207_vm0, %v2206_v1  ;;  %1836 = vmatpush3.bf16.msra.mxu0 %v2431_v26 }
  0x70   : > { %1837 = vmatprep.subr.bf16.mxu0 %v2206_v1 }
  0x73   : > { %1838 = vmatpush3.bf16.msra.mxu0 %v2435_v27 }
  0x74   : > { %1851 = vmatprep.subr.bf16.mxu0 %v2206_v1 }
 0x141   : > { %v332_v28 = vpop.f32.mrb[0].mxu0 }
 0x142   : > { %v345_v29 = vpack.c.bf16 %v332_v28, %v332_v28  ;;  %v1819_v30 = vpop.f32.mrb[1].mxu0 }
 0x143   : > { %v335_v31 = vpop.f32.mrb[2].mxu0 }
 0x144   : > { %v1820_v32 = vpop.f32.mrb[3].mxu0  ;;  %1824 = vmatmul.mubr.msk.bf16.vlgmr.msra.gmra.mrb[0].mxu1 %vm356_vm12, %v345_v29  ;;  %vm604_vm12 = vmand %vm237_vm3, %vm415_vm15 }
 0x145   : > { %1828 = vmatpush3.bf16.msra.mxu1 %v2431_v26  ;;  %1831 = vmatprep.mubr.msk.bf16.mxu1 %vm2207_vm0, %v2206_v1 }
 0x146   : > { %1829 = vmatprep.subr.bf16.mxu1 %v2206_v1 }
 0x149   : > { %1830 = vmatpush3.bf16.msra.mxu1 %v2435_v27 }
 0x14a   : > { %1843 = vmatprep.subr.bf16.mxu1 %v2206_v1 }
 0x14c   : > { %1832 = vmatmul.mubr.msk.bf16.vlgmr.msra.gmra.mrb[4].mxu1 %vm433_vm13, %v420_v34 }
 0x14d   : > { %1844 = vmatpush3.bf16.msra.mxu1 %v2431_v26  ;;  %1847 = vmatprep.mubr.msk.bf16.mxu1 %vm2207_vm0, %v2206_v1 }
 0x14e   : > { %1845 = vmatprep.subr.bf16.mxu1 %v2206_v1 }
 0x151   : > { %1846 = vmatpush3.bf16.msra.mxu1 %v2435_v27 }
 0x152   : > { %1859 = vmatprep.subr.bf16.mxu1 %v2206_v1 }
 0x217   : > { %v394_v37 = vpop.f32.mrb[0].mxu1 }
 0x218   : > { %v395_v38 = vadd.f32 %v1753_v35, %v394_v37  ;;  %v1825_v39 = vpop.f32.mrb[1].mxu1 }
 0x219   : > { %v397_v40 = vpop.f32.mrb[2].mxu1 }
 0x21a   : > { %v1826_v41 = vpop.f32.mrb[3].mxu1  ;;  %v519_v42 = vrot.slane %v395_v38, 5  ;;  %v612_v43 = vrot.slane %v395_v38, 3  ;;  %v707_v44 = vrot.slane %v395_v38, 1  ;;  %v417_v45 = vrot.slane %v395_v38, 7 }
 0x21c   : > { %v2453_v46 = vsel %vm414_vm14, %v395_v38, %v519_v42  ;;  %v2455_v47 = vsel %vm414_vm14, %v395_v38, %v612_v43  ;;  %v2457_v48 = vsel %vm414_vm14, %v395_v38, %v707_v44  ;;  %v2459_v49 = vsel %vm414_vm14, %v395_v38, %v417_v45  ;;  %vm610_vm14 = vmand %vm262_vm8, %vm2609_vm10 }
 0x21f   : > { %v471_v50 = vpop.f32.mrb[4].mxu1 }
 0x220   : > { %v477_v51 = vadd.f32 %v471_v50, %v2459_v49  ;;  %v1833_v52 = vpop.f32.mrb[5].mxu1 }
 0x221   : > { %v474_v53 = vpop.f32.mrb[6].mxu1 }
 0x222   : > { %1995 = vtanh.f32 %v477_v51  ;;  %v1834_v54 = vpop.f32.mrb[7].mxu1  ;;  %v1759_v57 = vmul.f32 -1.442695, %v477_v51 }
 0x224   : > { %1997 = vpow2.f32 %v1759_v57 }
 0x22c   : > { %v1996_v55 = vpop.eup %1995 }
 0x22d   : > { %491 = vrot.lane.b32.xlu0 %v1996_v55, %s2208_s9 }
 0x22e   : > { %v1998_v58 = vpop.eup %1997 }
 0x22f   : > { %v481_v59 = vadd.f32 1.0, %v1998_v58 }
 0x231   : > { %486 = vrot.lane.b32.xlu0 %v401_v56, %s2209_s17  ;;  %1999 = vrcp.f32 %v481_v59 }
 0x23b   : > { %v2000_v60 = vpop.eup %1999 }
 0x29f   : > { %v492_v61 = vpop.permute.xlu0 %491 }
 0x2a0   : > { %v494_v62 = vmul.f32 %v2000_v60, %v492_v61 }
 0x2a2   : > { %496 = vrot.lane.b32.xlu1 %v494_v62, %s2209_s17 }
 0x2a3   : > { %v487_v63 = vpop.permute.xlu0 %486 }
 0x2a4   : > { %v489_v0 = vmul.f32 %v2000_v60, %v487_v63 }
 0x314   : > { %v497_v3 = vpop.permute.xlu1 %496 }
 0x315   : > { %v499_v4 = vadd.f32 %v497_v3, %v489_v0 }
 0x317   : > { %2001 = vtanh.f32 %v499_v4  ;;  %v581_v24 = vrot.slane %v499_v4, 7 }
 0x321   : > { %v2002_v5 = vpop.eup %2001 }
 0x322   : > { %502 = vrot.lane.b32.xlu1 %v2002_v5, %s2208_s9 }
 0x394   : > { %v503_v6 = vpop.permute.xlu1 %502 }
 0x395   : > { %v2466_v7 = vmul.f32 %v2000_v60, %v503_v6 }
 0x397   : > { %v522_v8 = vpack.c.bf16 %v2466_v7, %v2466_v7 }
 0x399   : > { %524 = vrot.lane.b32.xlu0 %v522_v8, %s2209_s17 }
 0x40b   : > { %v525_v9 = vpop.permute.xlu0 %524 }
 0x40c   : > { %1840 = vmatmul.mubr.msk.bf16.vlgmr.msra.gmra.mrb[4].mxu0 %vm433_vm13, %v525_v9 }
 0x40d   : > { %1852 = vmatpush3.bf16.msra.mxu0 %v2431_v26  ;;  %1855 = vmatprep.mubr.msk.bf16.mxu0 %vm2207_vm0, %v2206_v1 }
 0x40e   : > { %1853 = vmatprep.subr.bf16.mxu0 %v2206_v1 }
 0x411   : > { %1854 = vmatpush3.bf16.msra.mxu0 %v2435_v27 }
 0x412   : > { %1867 = vmatprep.subr.bf16.mxu0 %v2206_v1 }
 0x4df   : > { %v563_v10 = vpop.f32.mrb[4].mxu0 }
 0x4e0   : > { %v570_v11 = vrot.slane %v563_v10, 7  ;;  %v1841_v12 = vpop.f32.mrb[5].mxu0 }
 0x4e1   : > { %v566_v13 = vpop.f32.mrb[6].mxu0 }
 0x4e2   : > { %v572_v14 = vadd.f32 %v570_v11, %v2453_v46  ;;  %v1842_v15 = vpop.f32.mrb[7].mxu0 }
 0x4e4   : > { %2003 = vtanh.f32 %v572_v14  ;;  %v1761_v17 = vmul.f32 -1.442695, %v572_v14 }
 0x4e6   : > { %2005 = vpow2.f32 %v1761_v17 }
 0x4ee   : > { %v2004_v16 = vpop.eup %2003 }
 0x4ef   : > { %585 = vrot.lane.b32.xlu1 %v2004_v16, %s2208_s9 }
 0x4f0   : > { %v2006_v18 = vpop.eup %2005 }
 0x4f1   : > { %v576_v19 = vadd.f32 1.0, %v2006_v18 }
 0x4f3   : > { %2007 = vrcp.f32 %v576_v19 }
 0x4fd   : > { %v2008_v20 = vpop.eup %2007 }
 0x4fe   : > { %v583_v25 = vmul.f32 %v2008_v20, %v581_v24 }
 0x561   : > { %v586_v22 = vpop.permute.xlu1 %585 }
 0x562   : > { %v588_v23 = vmul.f32 %v2008_v20, %v586_v22 }
 0x564   : > { %590 = vrot.lane.b32.xlu0 %v588_v23, %s2209_s17 }
 0x5d6   : > { %v591_v28 = vpop.permute.xlu0 %590 }
 0x5d7   : > { %v593_v29 = vadd.f32 %v591_v28, %v583_v25 }
 0x5d9   : > { %2009 = vtanh.f32 %v593_v29  ;;  %v676_v53 = vrot.slane %v593_v29, 7 }
 0x5e3   : > { %v2010_v30 = vpop.eup %2009 }
 0x5e4   : > { %596 = vrot.lane.b32.xlu1 %v2010_v30, %s2208_s9 }
 0x656   : > { %v597_v31 = vpop.permute.xlu1 %596 }
 0x657   : > { %v2482_v32 = vmul.f32 %v2008_v20, %v597_v31 }
 0x659   : > { %v615_v33 = vpack.c.bf16 %v2482_v32, %v2482_v32 }
 0x65b   : > { %v617_v34 = vshrl.u32 %v615_v33, 16 }
 0x65d   : > { %619 = vrot.lane.b32.xlu0 %v617_v34, %s2209_s17 }
 0x6cf   : > { %v620_v35 = vpop.permute.xlu0 %619 }
 0x6d0   : > { %1848 = vmatmul.mubr.msk.bf16.vlgmr.msra.gmra.mrb[8].mxu1 %vm433_vm13, %v620_v35 }
 0x6d1   : > { %1860 = vmatpush3.bf16.msra.mxu1 %v2431_v26  ;;  %1863 = vmatprep.mubr.msk.bf16.mxu1 %vm2207_vm0, %v2206_v1 }
 0x6d2   : > { %1861 = vmatprep.subr.bf16.mxu1 %v2206_v1 }
 0x6d5   : > { %1862 = vmatpush3.bf16.msra.mxu1 %v2435_v27 }
 0x6d6   : > { %1875 = vmatprep.subr.bf16.mxu1 %v2206_v1 }
 0x7a3   : > { %v658_v36 = vpop.f32.mrb[8].mxu1 }
 0x7a4   : > { %v665_v37 = vrot.slane %v658_v36, 6  ;;  %v1849_v38 = vpop.f32.mrb[9].mxu1 }
 0x7a5   : > { %v661_v39 = vpop.f32.mrb[10].mxu1 }
 0x7a6   : > { %v667_v40 = vadd.f32 %v665_v37, %v2455_v47  ;;  %v1850_v41 = vpop.f32.mrb[11].mxu1 }
 0x7a8   : > { %2011 = vtanh.f32 %v667_v40  ;;  %v1763_v43 = vmul.f32 -1.442695, %v667_v40 }
 0x7aa   : > { %2013 = vpow2.f32 %v1763_v43 }
 0x7b2   : > { %v2012_v42 = vpop.eup %2011 }
 0x7b3   : > { %680 = vrot.lane.b32.xlu1 %v2012_v42, %s2208_s9 }
 0x7b4   : > { %v2014_v44 = vpop.eup %2013 }
 0x7b5   : > { %v671_v45 = vadd.f32 1.0, %v2014_v44 }
 0x7b7   : > { %2015 = vrcp.f32 %v671_v45 }
 0x7c1   : > { %v2016_v50 = vpop.eup %2015 }
 0x7c2   : > { %v678_v54 = vmul.f32 %v2016_v50, %v676_v53 }
 0x825   : > { %v681_v51 = vpop.permute.xlu1 %680 }
 0x826   : > { %v683_v52 = vmul.f32 %v2016_v50, %v681_v51 }
 0x828   : > { %685 = vrot.lane.b32.xlu0 %v683_v52, %s2209_s17 }
 0x89a   : > { %v686_v55 = vpop.permute.xlu0 %685 }
 0x89b   : > { %v688_v56 = vadd.f32 %v686_v55, %v678_v54 }
 0x89d   : > { %2017 = vtanh.f32 %v688_v56  ;;  %v770_v15 = vrot.slane %v688_v56, 7 }
 0x8a7   : > { %v2018_v57 = vpop.eup %2017 }
 0x8a8   : > { %691 = vrot.lane.b32.xlu1 %v2018_v57, %s2208_s9 }
 0x91a   : > { %v692_v58 = vpop.permute.xlu1 %691 }
 0x91b   : > { %v2498_v59 = vmul.f32 %v2016_v50, %v692_v58 }
 0x91d   : > { %v710_v60 = vpack.c.bf16 %v2498_v59, %v2498_v59 }
 0x91f   : > { %v712_v61 = vrot.slane %v710_v60, 1 }
 0x921   : > { %713 = vrot.lane.b32.xlu0 %v712_v61, %s2209_s17 }
 0x993   : > { %v714_v62 = vpop.permute.xlu0 %713 }
 0x994   : > { %1856 = vmatmul.mubr.msk.bf16.vlgmr.msra.gmra.mrb[8].mxu0 %vm433_vm13, %v714_v62 }
 0x995   : > { %1868 = vmatpush3.bf16.msra.mxu0 %v2431_v26  ;;  %1871 = vmatprep.mubr.msk.bf16.mxu0 %vm2207_vm0, %v2206_v1 }
 0x996   : > { %1869 = vmatprep.subr.bf16.mxu0 %v2206_v1 }
 0x999   : > { %1870 = vmatpush3.bf16.msra.mxu0 %v2435_v27 }
 0x99a   : > { %1883 = vmatprep.subr.bf16.mxu0 %v2206_v1 }
 0xa67   : > { %v752_v63 = vpop.f32.mrb[8].mxu0 }
 0xa68   : > { %v759_v0 = vrot.slane %v752_v63, 5  ;;  %v1857_v3 = vpop.f32.mrb[9].mxu0 }
 0xa69   : > { %v755_v4 = vpop.f32.mrb[10].mxu0 }
 0xa6a   : > { %v761_v5 = vadd.f32 %v759_v0, %v2457_v48  ;;  %v1858_v6 = vpop.f32.mrb[11].mxu0 }
 0xa6c   : > { %2019 = vtanh.f32 %v761_v5  ;;  %v1765_v9 = vmul.f32 -1.442695, %v761_v5 }
 0xa6e   : > { %2021 = vpow2.f32 %v1765_v9 }
 0xa76   : > { %v2020_v8 = vpop.eup %2019 }
 0xa77   : > { %774 = vrot.lane.b32.xlu1 %v2020_v8, %s2208_s9 }
 0xa78   : > { %v2022_v10 = vpop.eup %2021 }
 0xa79   : > { %v765_v11 = vadd.f32 1.0, %v2022_v10 }
 0xa7b   : > { %2023 = vrcp.f32 %v765_v11 }
 0xa85   : > { %v2024_v12 = vpop.eup %2023 }
 0xa86   : > { %v772_v16 = vmul.f32 %v2024_v12, %v770_v15 }
 0xae9   : > { %v775_v13 = vpop.permute.xlu1 %774 }
 0xaea   : > { %v777_v14 = vmul.f32 %v2024_v12, %v775_v13 }
 0xaec   : > { %779 = vrot.lane.b32.xlu0 %v777_v14, %s2209_s17 }
 0xb5e   : > { %v780_v17 = vpop.permute.xlu0 %779 }
 0xb5f   : > { %v782_v18 = vadd.f32 %v780_v17, %v772_v16 }
 0xb61   : > { %2025 = vtanh.f32 %v782_v18  ;;  %v863_v43 = vrot.slane %v782_v18, 7 }
 0xb6b   : > { %v2026_v19 = vpop.eup %2025 }
 0xb6c   : > { %785 = vrot.lane.b32.xlu1 %v2026_v19, %s2208_s9 }
 0xbde   : > { %v786_v20 = vpop.permute.xlu1 %785 }
 0xbdf   : > { %v2514_v22 = vmul.f32 %v2024_v12, %v786_v20 }
 0xbe1   : > { %v801_v23 = vpack.c.bf16 %v2514_v22, %v2514_v22 }
 0xbe3   : > { %v803_v24 = vshrl.u32 %v801_v23, 16 }
 0xbe5   : > { %v805_v25 = vrot.slane %v803_v24, 1 }
 0xbe7   : > { %806 = vrot.lane.b32.xlu0 %v805_v25, %s2209_s17 }
 0xc59   : > { %v807_v28 = vpop.permute.xlu0 %806 }
 0xc5a   : > { %1864 = vmatmul.mubr.msk.bf16.vlgmr.msra.gmra.mrb[12].mxu1 %vm433_vm13, %v807_v28 }
 0xc5b   : > { %1876 = vmatpush3.bf16.msra.mxu1 %v2431_v26  ;;  %1879 = vmatprep.mubr.msk.bf16.mxu1 %vm2207_vm0, %v2206_v1 }
 0xc5c   : > { %1877 = vmatprep.subr.bf16.mxu1 %v2206_v1 }
 0xc5f   : > { %1878 = vmatpush3.bf16.msra.mxu1 %v2435_v27 }
 0xc60   : > { %1891 = vmatprep.subr.bf16.mxu1 %v2206_v1 }
 0xd2d   : > { %v845_v29 = vpop.f32.mrb[12].mxu1 }
 0xd2e   : > { %v852_v30 = vrot.slane %v845_v29, 4  ;;  %v1865_v31 = vpop.f32.mrb[13].mxu1 }
 0xd2f   : > { %v848_v33 = vpop.f32.mrb[14].mxu1 }
 0xd30   : > { %v854_v34 = vadd.f32 %v852_v30, %v2459_v49  ;;  %v1866_v35 = vpop.f32.mrb[15].mxu1 }
 0xd32   : > { %2027 = vtanh.f32 %v854_v34  ;;  %v1767_v37 = vmul.f32 -1.442695, %v854_v34 }
 0xd34   : > { %2029 = vpow2.f32 %v1767_v37 }
 0xd3c   : > { %v2028_v36 = vpop.eup %2027 }
 0xd3d   : > { %867 = vrot.lane.b32.xlu1 %v2028_v36, %s2208_s9 }
 0xd3e   : > { %v2030_v38 = vpop.eup %2029 }
 0xd3f   : > { %v858_v39 = vadd.f32 1.0, %v2030_v38 }
 0xd41   : > { %2031 = vrcp.f32 %v858_v39 }
 0xd4b   : > { %v2032_v40 = vpop.eup %2031 }
 0xd4c   : > { %v865_v44 = vmul.f32 %v2032_v40, %v863_v43 }
 0xdaf   : > { %v868_v41 = vpop.permute.xlu1 %867 }
 0xdb0   : > { %v870_v42 = vmul.f32 %v2032_v40, %v868_v41 }
 0xdb2   : > { %872 = vrot.lane.b32.xlu0 %v870_v42, %s2209_s17 }
 0xe24   : > { %v873_v45 = vpop.permute.xlu0 %872 }
 0xe25   : > { %v875_v50 = vadd.f32 %v873_v45, %v865_v44 }
 0xe27   : > { %2033 = vtanh.f32 %v875_v50 }
 0xe31   : > { %v2034_v49 = vpop.eup %2033 }
 0xe32   : > { %878 = vrot.lane.b32.xlu1 %v2034_v49, %s2208_s9 }
 0xea4   : > { %v879_v51 = vpop.permute.xlu1 %878 }
 0xea5   : > { %v2530_v52 = vmul.f32 %v2032_v40, %v879_v51 }
 0xea7   : > { %v894_v53 = vpack.c.bf16 %v2530_v52, %v2530_v52 }
 0xea9   : > { %v896_v54 = vrot.slane %v894_v53, 2 }
 0xeab   : > { %897 = vrot.lane.b32.xlu0 %v896_v54, %s2209_s17 }
 0xf1d   : > { %v898_v55 = vpop.permute.xlu0 %897 }
 0xf1e   : > { %1872 = vmatmul.mubr.msk.bf16.vlgmr.msra.gmra.mrb[12].mxu0 %vm433_vm13, %v898_v55 }
 0xf1f   : > { %1884 = vmatpush3.bf16.msra.mxu0 %v2431_v26  ;;  %1887 = vmatprep.mubr.msk.bf16.mxu0 %vm2207_vm0, %v2206_v1 }
 0xf20   : > { %1885 = vmatprep.subr.bf16.mxu0 %v2206_v1 }
 0xf23   : > { %1886 = vmatpush3.bf16.msra.mxu0 %v2435_v27  ;;  %v954_v27 = vrot.slane %v875_v50, 7 }
 0xff1   : > { %v936_v56 = vpop.f32.mrb[12].mxu0 }
 0xff2   : > { %v943_v57 = vrot.slane %v936_v56, 3  ;;  %v1873_v58 = vpop.f32.mrb[13].mxu0 }
 0xff3   : > { %v939_v60 = vpop.f32.mrb[14].mxu0 }
 0xff4   : > { %v945_v61 = vadd.f32 %v943_v57, %v2453_v46  ;;  %v1874_v62 = vpop.f32.mrb[15].mxu0 }
 0xff6   : > { %2035 = vtanh.f32 %v945_v61  ;;  %v1769_v0 = vmul.f32 -1.442695, %v945_v61  ;;  %v508_v61 = vsub.s32 0, %v2383_v2 }
 0xff8   : > { %2037 = vpow2.f32 %v1769_v0 }
0x1000   : > { %v2036_v63 = vpop.eup %2035 }
0x1001   : > { %958 = vrot.lane.b32.xlu1 %v2036_v63, %s2208_s9  ;;  %v697_v63 = vsub.s32 2, %v2383_v2 }
0x1002   : > { %v2038_v26 = vpop.eup %2037 }
0x1003   : > { %v949_v3 = vadd.f32 1.0, %v2038_v26  ;;  %v698_v0 = vrot.slane %v2498_v59, %v697_v63  ;;  %v884_v26 = vsub.s32 4, %v2383_v2 }
0x1005   : > { %2039 = vrcp.f32 %v949_v3  ;;  %v885_v3 = vrot.slane %v2530_v52, %v884_v26  ;;  %v1993_v52 = vld [vmem:[#allocation4 + $0x18] sm:$0xff]  }
0x100f   : > { %v2040_v4 = vpop.eup %2039 }
0x1010   : > { %v956_v8 = vmul.f32 %v2040_v4, %v954_v27 }
0x1073   : > { %v959_v5 = vpop.permute.xlu1 %958 }
0x1074   : > { %v961_v6 = vmul.f32 %v2040_v4, %v959_v5 }
0x1076   : > { %963 = vrot.lane.b32.xlu0 %v961_v6, %s2209_s17 }
0x10e8   : > { %v964_v9 = vpop.permute.xlu0 %963 }
0x10e9   : > { %v966_v10 = vadd.f32 %v964_v9, %v956_v8  ;;  %v602_v8 = vsub.s32 1, %v2383_v2 }
0x10eb   : > { %2041 = vtanh.f32 %v966_v10  ;;  %v1047_v35 = vrot.slane %v966_v10, 7  ;;  %v603_v10 = vrot.slane %v2482_v32, %v602_v8  ;;  %v1994_v32 = vld [vmem:[#allocation4 + $0x20] sm:$0xff]  }
0x10f5   : > { %v2042_v46 = vpop.eup %2041 }
0x10f6   : > { %969 = vrot.lane.b32.xlu1 %v2042_v46, %s2208_s9  ;;  %v791_v46 = vsub.s32 3, %v2383_v2 }
0x1168   : > { %v970_v11 = vpop.permute.xlu1 %969 }
0x1169   : > { %v2545_v12 = vmul.f32 %v2040_v4, %v970_v11  ;;  %v1068_v4 = vsub.s32 6, %v2383_v2  ;;  %v792_v11 = vrot.slane %v2514_v22, %v791_v46 }
0x116b   : > { %v985_v13 = vpack.c.bf16 %v2545_v12, %v2545_v12 }
0x116d   : > { %v987_v14 = vshrl.u32 %v985_v13, 16  ;;  %v975_v13 = vsub.s32 5, %v2383_v2 }
0x116f   : > { %v989_v15 = vrot.slane %v987_v14, 2  ;;  %v976_v14 = vrot.slane %v2545_v12, %v975_v13 }
0x1171   : > { %990 = vrot.lane.b32.xlu0 %v989_v15, %s2209_s17  ;;  %v1159_v15 = vsub.s32 7, %v2383_v2 }
0x11e3   : > { %v991_v16 = vpop.permute.xlu0 %990 }
0x11e4   : > { %1880 = vmatmul.mubr.msk.bf16.vlgmr.msra.gmra.mrb[16].mxu1 %vm433_vm13, %v991_v16 }
0x11e5   : > { %1895 = vmatprep.mubr.msk.bf16.mxu1 %vm2207_vm0, %v2206_v1  ;;  %1892 = vmatpush3.bf16.msra.mxu1 %v1993_v52  ;;  %vm510_vm0 = vmand %vm232_vm2, %vm415_vm15  ;;  %v2701_v52 = vld [vmem:[#allocation7 + $0x8] sm:$0x1f] }
0x11e6   : > { %1893 = vmatprep.subr.bf16.mxu1 %v2206_v1 }
0x11e9   : > { %1894 = vmatpush3.bf16.msra.mxu1 %v1994_v32 }
0x12b7   : > { %v1029_v17 = vpop.f32.mrb[16].mxu1 }
0x12b8   : > { %v1036_v18 = vrot.slane %v1029_v17, 2  ;;  %v1881_v19 = vpop.f32.mrb[17].mxu1 }
0x12b9   : > { %v1032_v20 = vpop.f32.mrb[18].mxu1 }
0x12ba   : > { %v1038_v23 = vadd.f32 %v1036_v18, %v2455_v47  ;;  %v1882_v24 = vpop.f32.mrb[19].mxu1 }
0x12bc   : > { %2043 = vtanh.f32 %v1038_v23  ;;  %v1771_v28 = vmul.f32 -1.442695, %v1038_v23 }
0x12be   : > { %2045 = vpow2.f32 %v1771_v28 }
0x12c6   : > { %v2044_v25 = vpop.eup %2043 }
0x12c7   : > { %1051 = vrot.lane.b32.xlu1 %v2044_v25, %s2208_s9 }
0x12c8   : > { %v2046_v29 = vpop.eup %2045 }
0x12c9   : > { %v1042_v30 = vadd.f32 1.0, %v2046_v29 }
0x12cb   : > { %2047 = vrcp.f32 %v1042_v30 }
0x12d5   : > { %v2048_v31 = vpop.eup %2047 }
0x12d6   : > { %v1049_v36 = vmul.f32 %v2048_v31, %v1047_v35 }
0x1339   : > { %v1052_v33 = vpop.permute.xlu1 %1051 }
0x133a   : > { %v1054_v34 = vmul.f32 %v2048_v31, %v1052_v33 }
0x133c   : > { %1056 = vrot.lane.b32.xlu0 %v1054_v34, %s2209_s17 }
0x13ae   : > { %v1057_v37 = vpop.permute.xlu0 %1056 }
0x13af   : > { %v1059_v38 = vadd.f32 %v1057_v37, %v1049_v36 }
0x13b1   : > { %2049 = vtanh.f32 %v1059_v38  ;;  %v1138_v5 = vrot.slane %v1059_v38, 7 }
0x13bb   : > { %v2050_v47 = vpop.eup %2049 }
0x13bc   : > { %1062 = vrot.lane.b32.xlu1 %v2050_v47, %s2208_s9 }
0x142e   : > { %v1063_v39 = vpop.permute.xlu1 %1062 }
0x142f   : > { %v1065_v40 = vmul.f32 %v2048_v31, %v1063_v39 }
0x1431   : > { %v1078_v41 = vpack.c.bf16 %v1065_v40, %v1065_v40 }
0x1433   : > { %v1080_v42 = vrot.slane %v1078_v41, 3 }
0x1435   : > { %1081 = vrot.lane.b32.xlu0 %v1080_v42, %s2209_s17 }
0x14a7   : > { %v1082_v43 = vpop.permute.xlu0 %1081 }
0x14a8   : > { %1888 = vmatmul.mubr.msk.bf16.vlgmr.msra.gmra.mrb[16].mxu0 %vm433_vm13, %v1082_v43 }
0x157b   : > { %v1120_v44 = vpop.f32.mrb[16].mxu0 }
0x157c   : > { %v1127_v45 = vrot.slane %v1120_v44, 1  ;;  %v1889_v50 = vpop.f32.mrb[17].mxu0 }
0x157d   : > { %v1123_v49 = vpop.f32.mrb[18].mxu0  ;;  %v2674_v50 = vld [vmem:[#allocation7 + $0x10] sm:$0x1f] }
0x157e   : > { %v1129_v51 = vadd.f32 %v1127_v45, %v2457_v48  ;;  %v1890_v53 = vpop.f32.mrb[19].mxu0  ;;  %v509_v48 = vrot.slane %v2466_v7, %v508_v61  ;;  %v1069_v7 = vrot.slane %v1065_v40, %v1068_v4  ;;  %v2211_v49 = vmov -10000.0  }
0x1580   : > { %2051 = vtanh.f32 %v1129_v51  ;;  %v1773_v55 = vmul.f32 -1.442695, %v1129_v51  ;;  %v1272_v51 = vsel %vm247_vm5, 0.0, %v2211_v49 }
0x1581   : > { %v1273_v53 = vadd.f32 %v1272_v51, %v2674_v50 }
0x1582   : > { %2053 = vpow2.f32 %v1773_v55 }
0x158a   : > { %v2052_v54 = vpop.eup %2051 }
0x158b   : > { %1142 = vrot.lane.b32.xlu1 %v2052_v54, %s2208_s9 }
0x158c   : > { %v2054_v56 = vpop.eup %2053 }
0x158d   : > { %v1133_v57 = vadd.f32 1.0, %v2054_v56 }
0x158f   : > { %2055 = vrcp.f32 %v1133_v57 }
0x1599   : > { %v2056_v58 = vpop.eup %2055 }
0x159a   : > { %v1140_v6 = vmul.f32 %v2056_v58, %v1138_v5 }
0x15fd   : > { %v1143_v60 = vpop.permute.xlu1 %1142 }
0x15fe   : > { %v1145_v62 = vmul.f32 %v2056_v58, %v1143_v60 }
0x1600   : > { %1147 = vrot.lane.b32.xlu0 %v1145_v62, %s2209_s17  ;;  %v1774_v62 = vld [vmem:[#allocation7 + $0x3] ss:$0 sm:$0xff] }
0x1604   : > { %512 = vrot.lane.b32.xlu0 %v509_v48, %s2209_s17 }
0x1608   : > { %701 = vrot.lane.b32.xlu0 %v698_v0, %s2209_s17 }
0x160c   : > { %888 = vrot.lane.b32.xlu0 %v885_v3, %s2209_s17 }
0x1610   : > { %1072 = vrot.lane.b32.xlu0 %v1069_v7, %s2209_s17 }
0x1672   : > { %v1148_v59 = vpop.permute.xlu0 %1147 }
0x1673   : > { %v1150_v27 = vadd.f32 %v1148_v59, %v1140_v6 }
0x1675   : > { %2057 = vtanh.f32 %v1150_v27 }
0x1676   : > { %v513_v12 = vpop.permute.xlu0 %512 }
0x1677   : > { %v515_v18 = vsel %vm510_vm0, %v513_v12, 0.0  ;;  %vm705_vm0 = vmand %vm257_vm7, %vm2609_vm10 }
0x1678   : > { %v518_v20 = vsel %vm517_vm11, %v513_v12, %v515_v18  ;;  %vm793_vm11 = vmand %vm247_vm5, %vm415_vm15 }
0x167a   : > { %v702_v25 = vpop.permute.xlu0 %701 }
0x167e   : > { %v889_v34 = vpop.permute.xlu0 %888 }
0x167f   : > { %v2058_v9 = vpop.eup %2057 }
0x1680   : > { %1153 = vrot.lane.b32.xlu1 %v2058_v9, %s2208_s9 }
0x1682   : > { %v1073_v39 = vpop.permute.xlu0 %1072 }
0x1684   : > { %606 = vrot.lane.b32.xlu1 %v603_v10, %s2209_s17 }
0x1688   : > { %795 = vrot.lane.b32.xlu1 %v792_v11, %s2209_s17 }
0x168c   : > { %979 = vrot.lane.b32.xlu1 %v976_v14, %s2209_s17 }
0x16f2   : > { %v1154_v16 = vpop.permute.xlu1 %1153 }
0x16f3   : > { %v1156_v1 = vmul.f32 %v2056_v58, %v1154_v16 }
0x16f5   : > { %v1160_v17 = vrot.slane %v1156_v1, %v1159_v15 }
0x16f6   : > { %v607_v19 = vpop.permute.xlu1 %606 }
0x16f7   : > { %1163 = vrot.lane.b32.xlu1 %v1160_v17, %s2209_s17  ;;  %v609_v23 = vsel %vm604_vm12, %v607_v19, %v518_v20  ;;  %vm799_vm12 = vmand %vm252_vm6, %vm2609_vm10  ;;  %s214_s17 = sand.u32 1, %s2189_s29  }
0x16f8   : > { %v611_v24 = vsel %vm610_vm14, %v607_v19, %v609_v23  ;;  %vm886_vm14 = vmand %vm252_vm6, %vm415_vm15  ;;  %s215_s19 = scalar_lea.vmem [#allocation9], %s214_s17  ;;  %s1610_s0 = scalar_lea.sflag [#allocation6], %s214_s17 }
0x16f9   : > { %v704_v28 = vsel %vm699_vm1, %v702_v25, %v611_v24  ;;  %vm892_vm1 = vmand %vm247_vm5, %vm2609_vm10  ;;  %vm1238_vm5 = vcmp.eq.s32.totalorder %v2383_v2, %v2422_v21  ;;  %s1629_s10 = sshll.u32 %s215_s19, 4  ;;  %s2870_s10 = int_to_ptr.vmem [resolvable:$true] %s1629_s10 }
0x16fa   : > { %v706_v29 = vsel %vm705_vm0, %v702_v25, %v704_v28  ;;  %v796_v30 = vpop.permute.xlu1 %795  ;;  %vm977_vm0 = vmand %vm257_vm7, %vm415_vm15 }
0x16fb   : > { %v798_v31 = vsel %vm793_vm11, %v796_v30, %v706_v29  ;;  %vm983_vm6 = vmand %vm242_vm4, %vm2609_vm10 }
0x16fc   : > { %v800_v33 = vsel %vm799_vm12, %v796_v30, %v798_v31  ;;  %vm1070_vm11 = vmand %vm262_vm8, %vm415_vm15 }
0x16fd   : > { %v891_v35 = vsel %vm886_vm14, %v889_v34, %v800_v33  ;;  %vm1076_vm7 = vmand %vm237_vm3, %vm2609_vm10  ;;  %vm1244_vm3 = vcmask 36864  }
0x16fe   : > { %v893_v36 = vsel %vm892_vm1, %v889_v34, %v891_v35  ;;  %v980_v37 = vpop.permute.xlu1 %979  ;;  %vm1161_vm12 = vmand %vm267_vm9, %vm415_vm15  ;;  %v1274_v54 = vsel %vm1244_vm3, %v1273_v53, -inf  ;;  %vm1602_vm1 = vcmask 0  }
0x16ff   : > { %v982_v38 = vsel %vm977_vm0, %v980_v37, %v893_v36  ;;  %vm1167_vm4 = vmand %vm232_vm2, %vm2609_vm10  ;;  %v1275_v55 = vrot.slane %v1274_v54, 4  ;;  %vm1234_vm2 = vcmask 39936   ;;  %vm1450_vm10 = vcmask 36896  }
0x1700   : > { %v984_v47 = vsel %vm983_vm6, %v980_v37, %v982_v38 }
0x1701   : > { %v1075_v40 = vsel %vm1070_vm11, %v1073_v39, %v984_v47  ;;  %v1276_v56 = vmax.f32 %v1274_v54, %v1275_v55 }
0x1702   : > { %v1077_v41 = vsel %vm1076_vm7, %v1073_v39, %v1075_v40 }
0x1703   : > { %v1277_v57 = vrot.slane %v1276_v56, 2 }
0x1705   : > { %v1278_v58 = vmax.f32 %v1276_v56, %v1277_v57 }
0x1707   : > { %v1279_v60 = vrot.slane %v1278_v58, 1 }
0x1709   : > { %v1280_v48 = vmax.f32 %v1278_v58, %v1279_v60 }
0x1769   : > { %v1164_v42 = vpop.permute.xlu1 %1163 }
0x176a   : > { %v1166_v43 = vsel %vm1161_vm12, %v1164_v42, %v1077_v41 }
0x176b   : > { %v1168_v44 = vsel %vm1167_vm4, %v1164_v42, %v1166_v43 }
0x176c   : > { %v1174_v45 = vpack.c.bf16 %v1168_v44, %v1168_v44 }
0x176e   : > { %1896 = vmatmul.mubr.msk.bf16.vlgmr.msra.gmra.mrb[20].mxu1 %vm433_vm13, %v1174_v45 }
0x1841   : > { %v1228_v0 = vpop.f32.mrb[20].mxu1 }
0x1842   : > { %v2688_v3 = vadd.f32 %v1774_v62, %v1228_v0  ;;  %v1897_v7 = vpop.f32.mrb[21].mxu1 }
0x1843   : > { %v1231_v5 = vpop.f32.mrb[22].mxu1 }
0x1844   : > { %v1898_v6 = vpop.f32.mrb[23].mxu1  ;;  %v1242_v59 = vrot.slane %v2688_v3, %v602_v8  ;;  %v1281_v27 = vadd.f32 %v1280_v48, %v2688_v3  ;;  %v1251_v9 = vrot.slane %v2688_v3, %v791_v46  ;;  %1235 = vst.msk [vmem:[%s228_s18] sm:$0xff] %vm1234_vm2, %v2688_v3  ;;  %v1259_v14 = vrot.slane %v2688_v3, %v975_v13 }
0x1845   : > { %v1267_v13 = vrot.slane %v2688_v3, %v1159_v15 }
0x1846   : > { %v1243_v10 = vsel %vm1238_vm5, %v1242_v59, 0.0  ;;  %v1285_v11 = vrot.slane %v1281_v27, %v508_v61  ;;  %v1252_v32 = vsel %vm1238_vm5, %v1251_v9, 0.0  ;;  %v1260_v1 = vsel %vm1238_vm5, %v1259_v14, 0.0 }
0x1847   : > { %v1245_v8 = vsel %vm1244_vm3, %v1243_v10, 0.0  ;;  %v1253_v61 = vsel %vm1244_vm3, %v1252_v32, 0.0  ;;  %v1261_v17 = vsel %vm1244_vm3, %v1260_v1, 0.0  ;;  %v1268_v22 = vsel %vm1238_vm5, %v1267_v13, 0.0 }
0x1848   : > { %1246 = vadd.xlane.f32.xlu0 %v1245_v8  ;;  %v2713_v46 = vadd.f32 %v1285_v11, %v2701_v52  ;;  %v1269_v12 = vsel %vm1244_vm3, %v1268_v22, 0.0  ;;  %vm1494_vm5 = vcmask 1044480  }
0x184a   : > { %v1287_v16 = vsel %vm1244_vm3, %v2713_v46, -inf }
0x184b   : > { %1288 = vmax.xlane.f32.xlu1 %v1287_v16 }
0x184c   : > { %1254 = vadd.xlane.f32.xlu0 %v1253_v61 }
0x184f   : > { %1262 = vadd.xlane.f32.xlu1 %v1261_v17 }
0x1853   : > { %1270 = vadd.xlane.f32.xlu1 %v1269_v12 }
0x18d5   : > { %v1247_v18 = vpop.xlane.xlu0 %1246 }
0x18d8   : > { %v2732_v19 = vpop.xlane.xlu1 %1288 }
0x18d9   : > { %v1307_v20 = vadd.f32 %v2732_v19, %v1247_v18  ;;  %v1255_v37 = vpop.xlane.xlu0 %1254 }
0x18db   : > { %v2736_v23 = vadd.f32 %v1307_v20, %v2674_v50 }
0x18dc   : > { %v1263_v55 = vpop.xlane.xlu1 %1262 }
0x18dd   : > { %v1309_v15 = vsel %vm1244_vm3, %v2736_v23, -inf }
0x18de   : > { %v1310_v24 = vrot.slane %v1309_v15, 4 }
0x18e0   : > { %v1311_v25 = vmax.f32 %v1309_v15, %v1310_v24  ;;  %v1271_v10 = vpop.xlane.xlu1 %1270 }
0x18e2   : > { %v1312_v28 = vrot.slane %v1311_v25, 2 }
0x18e4   : > { %v1313_v29 = vmax.f32 %v1311_v25, %v1312_v28 }
0x18e6   : > { %v1314_v30 = vrot.slane %v1313_v29, 1 }
0x18e8   : > { %v2740_v31 = vmax.f32 %v1313_v29, %v1314_v30 }
0x18ea   : > { %vm1316_vm8 = vcmp.eq.f32.partialorder %v2736_v23, %v2740_v31  ;;  %v1328_v33 = vadd.f32 %v2740_v31, %v2688_v3 }
0x18ec   : > { %v1332_v34 = vrot.slane %v1328_v33, %v697_v63 }
0x18ee   : > { %v2749_v35 = vadd.f32 %v1332_v34, %v2701_v52 }
0x18f0   : > { %v1334_v36 = vsel %vm1244_vm3, %v2749_v35, -inf }
0x18f1   : > { %1335 = vmax.xlane.f32.xlu0 %v1334_v36 }
0x197e   : > { %v2753_v38 = vpop.xlane.xlu0 %1335 }
0x197f   : > { %v1354_v47 = vadd.f32 %v2753_v38, %v1255_v37 }
0x1981   : > { %v2757_v39 = vadd.f32 %v1354_v47, %v2674_v50 }
0x1983   : > { %v1356_v40 = vsel %vm1244_vm3, %v2757_v39, -inf }
0x1984   : > { %v1357_v41 = vrot.slane %v1356_v40, 4 }
0x1986   : > { %v1358_v63 = vmax.f32 %v1356_v40, %v1357_v41 }
0x1988   : > { %v1359_v42 = vrot.slane %v1358_v63, 2 }
0x198a   : > { %v1360_v43 = vmax.f32 %v1358_v63, %v1359_v42 }
0x198c   : > { %v1361_v44 = vrot.slane %v1360_v43, 1 }
0x198e   : > { %v2761_v45 = vmax.f32 %v1360_v43, %v1361_v44 }
0x1990   : > { %vm1363_vm9 = vcmp.eq.f32.partialorder %v2757_v39, %v2761_v45  ;;  %v1375_v49 = vadd.f32 %v2761_v45, %v2688_v3 }
0x1992   : > { %v1379_v51 = vrot.slane %v1375_v49, %v884_v26 }
0x1994   : > { %v1380_v53 = vadd.f32 %v1379_v51, %v2701_v52 }
0x1996   : > { %v1381_v54 = vsel %vm1244_vm3, %v1380_v53, -inf }
0x1997   : > { %1382 = vmax.xlane.f32.xlu0 %v1381_v54 }
0x1a24   : > { %v1383_v56 = vpop.xlane.xlu0 %1382 }
0x1a25   : > { %v1401_v57 = vadd.f32 %v1383_v56, %v1263_v55  ;;  %vm1384_vm6 = vcmp.eq.f32.partialorder %v1380_v53, %v1383_v56 }
0x1a26   : > { %v1385_v34 = vsel %vm1384_vm6, %v2422_v21, 5 }
0x1a27   : > { %v2772_v58 = vadd.f32 %v1401_v57, %v2674_v50  ;;  %v2798_v37 = vsel %vm1244_vm3, %v1385_v34, 2147483647 }
0x1a28   : > { %v1388_v41 = vshra.s32 %v2798_v37, 16 }
0x1a29   : > { %v1403_v60 = vsel %vm1244_vm3, %v2772_v58, -inf }
0x1a2a   : > { %v1404_v62 = vrot.slane %v1403_v60, 4  ;;  %v2801_v42 = vcvt.s32.f32 %v1388_v41 }
0x1a2c   : > { %v1405_v48 = vmax.f32 %v1403_v60, %v1404_v62 }
0x1a2e   : > { %v1406_v0 = vrot.slane %v1405_v48, 2 }
0x1a30   : > { %v1407_v7 = vmax.f32 %v1405_v48, %v1406_v0 }
0x1a32   : > { %v1408_v5 = vrot.slane %v1407_v7, 1 }
0x1a34   : > { %v2776_v26 = vmax.f32 %v1407_v7, %v1408_v5 }
0x1a36   : > { %vm1410_vm13 = vcmp.eq.f32.partialorder %v2772_v58, %v2776_v26  ;;  %v1422_v6 = vadd.f32 %v2776_v26, %v2688_v3 }
0x1a38   : > { %v1426_v59 = vrot.slane %v1422_v6, %v1068_v4 }
0x1a3a   : > { %v1427_v27 = vadd.f32 %v1426_v59, %v2701_v52 }
0x1a3c   : > { %v1428_v9 = vsel %vm1244_vm3, %v1427_v27, -inf }
0x1a3d   : > { %1429 = vmax.xlane.f32.xlu0 %v1428_v9 }
0x1aca   : > { %v1430_v11 = vpop.xlane.xlu0 %1429 }
0x1acb   : > { %vm1431_vm15 = vcmp.eq.f32.partialorder %v1427_v27, %v1430_v11  ;;  %v1448_v8 = vadd.f32 %v1430_v11, %v1271_v10 }
0x1acc   : > { %v1432_v14 = vsel %vm1431_vm15, %v2422_v21, 5 }
0x1acd   : > { %v1449_v32 = vadd.f32 %v1448_v8, %v2674_v50  ;;  %v1433_v16 = vsel %vm1244_vm3, %v1432_v14, 2147483647 }
0x1ace   : > { %v1435_v3 = vshra.s32 %v1433_v16, 16  ;;  %v1434_v1 = vand.u32 65535, %v1433_v16 }
0x1acf   : > { %v1451_v61 = vsel %vm1450_vm10, %v1449_v32, -inf }
0x1ad0   : > { %1452 = vmax.xlane.f32.xlu1 %v1451_v61  ;;  %v1437_v4 = vcvt.s32.f32 %v1435_v3  ;;  %v1436_v12 = vcvt.s32.f32 %v1434_v1  ;;  %v1411_v3 = vsel %vm1410_vm13, %v2383_v2, 5 }
0x1ad1   : > { %v1412_v61 = vsel %vm1244_vm3, %v1411_v3, 2147483647 }
0x1ad4   : > { %1438 = vmin.xlane.f32.xlu1 %v1437_v4 }
0x1b5d   : > { %v1453_v52 = vpop.xlane.xlu1 %1452 }
0x1b5e   : > { %v1454_v13 = vrot.slane %v1453_v52, 4 }
0x1b60   : > { %v1455_v17 = vmax.f32 %v1453_v52, %v1454_v13 }
0x1b61   : > { %v1439_v22 = vpop.xlane.xlu1 %1438 }
0x1b62   : > { %v1456_v18 = vrot.slane %v1455_v17, 2  ;;  %vm1440_vm14 = vcmp.eq.f32.partialorder %v1437_v4, %v1439_v22  ;;  %v1445_v0 = vcvt.f32.s32 %v1439_v22  ;;  %v1413_v4 = vrot.slane %v1412_v61, 4 }
0x1b63   : > { %v1441_v20 = vsel %vm1440_vm14, %v1436_v12, inf }
0x1b64   : > { %1442 = vmin.xlane.f32.xlu1 %v1441_v20  ;;  %v1457_v50 = vmax.f32 %v1455_v17, %v1456_v18  ;;  %v1446_v5 = vshll.u32 %v1445_v0, 16 }
0x1b66   : > { %v1458_v15 = vrot.slane %v1457_v50, 1 }
0x1b68   : > { %v1459_v24 = vmax.f32 %v1457_v50, %v1458_v15 }
0x1b6a   : > { %1899 = vpush %v1459_v24 }
0x1b9b   : > { %s1900_s23 = spop %1899 }
0x1b9c   : > { %v1461_v25 = vstv %s1900_s23  ;;  %s2212_s23 = smov [#allocation9]  }
0x1b9d   : > { %vm1462_vm0 = vcmp.eq.f32.partialorder %v1449_v32, %v1461_v25  ;;  %1603 = vst.msk [vmem:[%s224_s22] sm:$0x1] %vm1602_vm1, %v1461_v25  ;;  %vm1337_vm1 = vcmp.eq.f32.partialorder %v2749_v35, %v2753_v38  ;;  %v1387_v25 = vand.u32 65535, %v2798_v37  ;;  %s2125_s22 = scalar_lea.vmem %s2870_s10, 16 }
0x1b9e   : > { %v1463_v28 = vsel %vm1462_vm0, %v2383_v2, 5  ;;  %vm1489_vm0 = vcmp.eq.s32.totalorder %v2422_v21, 7  ;;  %v1338_v58 = vsel %vm1337_vm1, %v2422_v21, 5  ;;  %p2126_p13 = scmp.ne.s32.totalorder %s2870_s10, %s2125_s22 }
0x1b9f   : > { %v1464_v29 = vsel %vm1450_vm10, %v1463_v28, 2147483647  ;;  %vm1414_vm10 = vcmp.lt.s32.totalorder %v1412_v61, %v1413_v4  ;;  %v2819_v15 = vsel %vm1244_vm3, %v1338_v58, 2147483647 }
0x1ba0   : > { %v1466_v30 = vshra.s32 %v1464_v29, 16  ;;  %v1465_v36 = vand.u32 65535, %v1464_v29  ;;  %v1415_v52 = vsel %vm1414_vm10, %v1412_v61, %v1413_v4  ;;  %p2127_p5 = pnand %p2126_p13, %p2930_p4 }
0x1ba1   : > { %v1416_v1 = vrot.slane %v1415_v52, 2 }
0x1ba2   : > { %v1468_v33 = vcvt.s32.f32 %v1466_v30  ;;  %v1467_v40 = vcvt.s32.f32 %v1465_v36  ;;  %v1341_v30 = vshra.s32 %v2819_v15, 16  ;;  %p2128_p6 = pneg %p2127_p5 }
0x1ba3   : > { %vm1417_vm14 = vcmp.lt.s32.totalorder %v1415_v52, %v1416_v1 }
0x1ba4   : > { %1469 = vmin.xlane.f32.xlu0 %v1468_v33  ;;  %v1418_v13 = vsel %vm1417_vm14, %v1415_v52, %v1416_v1  ;;  %v2824_v34 = vcvt.s32.f32 %v1341_v30  ;;  %vm1290_vm14 = vcmp.eq.f32.partialorder %v2713_v46, %v2732_v19  ;;  %v1340_v19 = vand.u32 65535, %v2819_v15 }
0x1ba5   : > { %v1419_v17 = vrot.slane %v1418_v13, 1 }
0x1ba6   : > { %v1342_v58 = vcvt.s32.f32 %v1340_v19 }
0x1ba7   : > { %vm1420_vm6 = vcmp.lt.s32.totalorder %v1418_v13, %v1419_v17 }
0x1ba8   : > { %v1421_v12 = vsel %vm1420_vm6, %v1418_v13, %v1419_v17 }
0x1bf1   : > { %v1443_v48 = vpop.xlane.xlu1 %1442 }
0x1bf2   : > { %v1444_v7 = vcvt.f32.s32 %v1443_v48 }
0x1bf4   : > { %v1447_v6 = vadd.s32 %v1446_v5, %v1444_v7 }
0x1c31   : > { %v1470_v47 = vpop.xlane.xlu0 %1469 }
0x1c32   : > { %vm1471_vm11 = vcmp.eq.f32.partialorder %v1468_v33, %v1470_v47  ;;  %v1476_v43 = vcvt.f32.s32 %v1470_v47  ;;  %v1389_v33 = vcvt.s32.f32 %v1387_v25 }
0x1c33   : > { %v1472_v63 = vsel %vm1471_vm11, %v1467_v40, inf  ;;  %vm1503_vm11 = vcmp.eq.s32.totalorder %v2422_v21, 6 }
0x1c34   : > { %1473 = vmin.xlane.f32.xlu0 %v1472_v63  ;;  %v1477_v49 = vshll.u32 %v1476_v43, 16 }
0x1c38   : > { %1391 = vmin.xlane.f32.xlu0 %v2801_v42 }
0x1cc1   : > { %v1474_v44 = vpop.xlane.xlu0 %1473 }
0x1cc2   : > { %v1475_v51 = vcvt.f32.s32 %v1474_v44 }
0x1cc4   : > { %v1478_v53 = vadd.s32 %v1477_v49, %v1475_v51 }
0x1cc5   : > { %v1392_v24 = vpop.xlane.xlu0 %1391 }
0x1cc6   : > { %v1479_v54 = vrot.slane %v1478_v53, 4  ;;  %v1398_v49 = vcvt.f32.s32 %v1392_v24 }
0x1cc8   : > { %vm1480_vm7 = vcmp.lt.s32.totalorder %v1478_v53, %v1479_v54 }
0x1cc9   : > { %v1481_v55 = vsel %vm1480_vm7, %v1478_v53, %v1479_v54  ;;  %vm1393_vm7 = vcmp.eq.f32.partialorder %v2801_v42, %v1392_v24  ;;  %v1399_v53 = vshll.u32 %v1398_v49, 16 }
0x1cca   : > { %v1482_v56 = vrot.slane %v1481_v55, 2  ;;  %v1394_v36 = vsel %vm1393_vm7, %v1389_v33, inf }
0x1ccc   : > { %vm1483_vm12 = vcmp.lt.s32.totalorder %v1481_v55, %v1482_v56 }
0x1ccd   : > { %v1484_v57 = vsel %vm1483_vm12, %v1481_v55, %v1482_v56  ;;  %vm1522_vm12 = vcmp.eq.s32.totalorder %v2422_v21, 5 }
0x1cce   : > { %v1485_v60 = vrot.slane %v1484_v57, 1 }
0x1cd0   : > { %vm1486_vm4 = vcmp.lt.s32.totalorder %v1484_v57, %v1485_v60 }
0x1cd1   : > { %v1487_v62 = vsel %vm1486_vm4, %v1484_v57, %v1485_v60 }
0x1cd2   : > { %1901 = vpush %v1487_v62 }
0x1d03   : > { %s1902_s24 = spop %1901 }
0x1d04   : > { %v1490_v59 = vstv %s1902_s24  ;;  %s2129_s24 = sshll.u32 %s2212_s23, 4  ;;  %s2130_s24 = int_to_ptr.vmem [resolvable:$false] %s2129_s24 }
0x1d05   : > { %vm1492_vm15 = vcmp.eq.s32.totalorder %v2383_v2, %v1490_v59  ;;  %v1491_v26 = vsel %vm1489_vm0, %v1490_v59, 0  ;;  %vm1535_vm0 = vcmp.eq.s32.totalorder %v2422_v21, 4  ;;  %p2132_p7 = scmp.lt.s32.totalorder %s2870_s10, %s2130_s24 }
0x1d06   : > { %v1493_v27 = vsel %vm1492_vm15, %v1447_v6, 0  ;;  %v1364_v6 = vsel %vm1363_vm9, %v2383_v2, 5 }
0x1d07   : > { %v1495_v9 = vsel %vm1494_vm5, %v1493_v27, 0  ;;  %v1365_v59 = vsel %vm1244_vm3, %v1364_v6, 2147483647 }
0x1d08   : > { %v1496_v10 = vrot.slane %v1495_v9, 4  ;;  %v1366_v27 = vrot.slane %v1365_v59, 4 }
0x1d0a   : > { %v1497_v11 = vadd.s32 %v1496_v10, %v1495_v9  ;;  %vm1367_vm15 = vcmp.lt.s32.totalorder %v1365_v59, %v1366_v27 }
0x1d0b   : > { %v1368_v9 = vsel %vm1367_vm15, %v1365_v59, %v1366_v27  ;;  %vm1567_vm15 = vcmp.eq.s32.totalorder %v2422_v21, 2 }
0x1d0c   : > { %v1498_v8 = vrot.slane %v1497_v11, 2  ;;  %v1369_v10 = vrot.slane %v1368_v9, 2 }
0x1d0e   : > { %v1499_v14 = vadd.s32 %v1498_v8, %v1497_v11  ;;  %vm1370_vm10 = vcmp.lt.s32.totalorder %v1368_v9, %v1369_v10 }
0x1d0f   : > { %v1371_v11 = vsel %vm1370_vm10, %v1368_v9, %v1369_v10 }
0x1d10   : > { %v1500_v32 = vrot.slane %v1499_v14, 1  ;;  %v1372_v8 = vrot.slane %v1371_v11, 1 }
0x1d12   : > { %v1501_v16 = vadd.s32 %v1500_v32, %v1499_v14  ;;  %vm1373_vm1 = vcmp.lt.s32.totalorder %v1371_v11, %v1372_v8  ;;  %v1291_v14 = vsel %vm1290_vm14, %v2422_v21, 5  ;;  %vm1599_vm14 = vcmp.eq.s32.totalorder %v2422_v21, 0 }
0x1d13   : > { %v1374_v45 = vsel %vm1373_vm1, %v1371_v11, %v1372_v8  ;;  %v2842_v61 = vsel %vm1244_vm3, %v1291_v14, 2147483647  ;;  %vm1604_vm1 = vcmask 57344  }
0x1d14   : > { %1903 = vpush %v1501_v16  ;;  %v1294_v17 = vshra.s32 %v2842_v61, 16 }
0x1d45   : > { %s1904_s25 = spop %1903 }
0x1d46   : > { %v1504_v22 = vstv %s1904_s25  ;;  %s2131_s25 = scalar_lea.vmem %s2130_s24, 32 }
0x1d47   : > { %v1505_v18 = vsel %vm1503_vm11, %v1504_v22, %v1491_v26  ;;  %vm1506_vm13 = vcmp.eq.s32.totalorder %v2422_v21, %v1504_v22  ;;  %v1296_v26 = vcvt.s32.f32 %v1294_v17  ;;  %vm1554_vm11 = vcmp.eq.s32.totalorder %v2422_v21, 3  ;;  %p2133_p10 = scmp.lt.s32.totalorder %s2131_s25, %s2125_s22 }
0x1d48   : > { %v1507_v20 = vsel %vm1506_vm13, %v1421_v12, 0 }
0x1d49   : > { %v1508_v50 = vsel %vm1234_vm2, %v1507_v20, 0  ;;  %p2134_p11 = por %p2133_p10, %p2132_p7 }
0x1d4a   : > { %v1510_v35 = vshrl.u32 %v1508_v50, 16  ;;  %v1509_v38 = vand.u32 65535, %v1508_v50 }
0x1d4b   : > { %p2135_p0 = pnand %p2134_p11, %p2128_p6 }
0x1d4c   : > { %v1512_v28 = vcvt.s32.f32 %v1510_v35  ;;  %v1511_v29 = vcvt.s32.f32 %v1509_v38 }
0x1d4e   : > { %1515 = vadd.xlane.f32.xlu1 %v1512_v28  ;;  %1513 = vadd.xlane.f32.xlu0 %v1511_v29 }
0x1d52   : > { %1395 = vmin.xlane.f32.xlu1 %v1394_v36  ;;  %1344 = vmin.xlane.f32.xlu0 %v2824_v34 }
0x1ddb   : > { %v1516_v47 = vpop.xlane.xlu1 %1515  ;;  %v1514_v40 = vpop.xlane.xlu0 %1513 }
0x1ddc   : > { %v1518_v41 = vcvt.f32.s32 %v1516_v47  ;;  %v1517_v37 = vcvt.f32.s32 %v1514_v40 }
0x1dde   : > { %v1519_v63 = vshll.u32 %v1518_v41, 16 }
0x1ddf   : > { %v1396_v44 = vpop.xlane.xlu1 %1395  ;;  %v1345_v46 = vpop.xlane.xlu0 %1344 }
0x1de0   : > { %v1520_v43 = vadd.s32 %v1519_v63, %v1517_v37  ;;  %v1397_v51 = vcvt.f32.s32 %v1396_v44  ;;  %vm1346_vm6 = vcmp.eq.f32.partialorder %v2824_v34, %v1345_v46  ;;  %v1351_v24 = vcvt.f32.s32 %v1345_v46 }
0x1de1   : > { %v1347_v22 = vsel %vm1346_vm6, %v1342_v58, inf  ;;  %v1317_v44 = vsel %vm1316_vm8, %v2383_v2, 5 }
0x1de2   : > { %1905 = vpush %v1520_v43  ;;  %v1400_v42 = vadd.s32 %v1399_v53, %v1397_v51  ;;  %v1352_v28 = vshll.u32 %v1351_v24, 16  ;;  %v1318_v49 = vsel %vm1244_vm3, %v1317_v44, 2147483647 }
0x1de3   : > { %v1319_v51 = vrot.slane %v1318_v49, 4 }
0x1de5   : > { %vm1320_vm7 = vcmp.lt.s32.totalorder %v1318_v49, %v1319_v51 }
0x1de6   : > { %v1321_v53 = vsel %vm1320_vm7, %v1318_v49, %v1319_v51 }
0x1e13   : > { %s1906_s16 = spop %1905 }
0x1e14   : > { %v1523_v54 = vstv %s1906_s16 }
0x1e15   : > { %v1524_v55 = vsel %vm1522_vm12, %v1523_v54, %v1505_v18  ;;  %vm1525_vm4 = vcmp.eq.s32.totalorder %v2383_v2, %v1523_v54 }
0x1e16   : > { %v1526_v56 = vsel %vm1525_vm4, %v1400_v42, 0  ;;  %v1322_v42 = vrot.slane %v1321_v53, 2 }
0x1e17   : > { %v1527_v57 = vsel %vm1494_vm5, %v1526_v56, 0 }
0x1e18   : > { %v1528_v60 = vrot.slane %v1527_v57, 4  ;;  %vm1323_vm12 = vcmp.lt.s32.totalorder %v1321_v53, %v1322_v42 }
0x1e19   : > { %v1324_v54 = vsel %vm1323_vm12, %v1321_v53, %v1322_v42 }
0x1e1a   : > { %v1529_v62 = vadd.s32 %v1528_v60, %v1527_v57 }
0x1e1c   : > { %v1530_v48 = vrot.slane %v1529_v62, 2 }
0x1e1e   : > { %v1531_v0 = vadd.s32 %v1530_v48, %v1529_v62 }
0x1e20   : > { %v1532_v7 = vrot.slane %v1531_v0, 1 }
0x1e22   : > { %v1533_v5 = vadd.s32 %v1532_v7, %v1531_v0  ;;  %v1293_v7 = vand.u32 65535, %v2842_v61 }
0x1e24   : > { %1907 = vpush %v1533_v5  ;;  %v1295_v59 = vcvt.s32.f32 %v1293_v7 }
0x1e55   : > { %s1908_s26 = spop %1907 }
0x1e56   : > { %v1536_v39 = vstv %s1908_s26 }
0x1e57   : > { %v1537_v32 = vsel %vm1535_vm0, %v1536_v39, %v1524_v55  ;;  %vm1538_vm9 = vcmp.eq.s32.totalorder %v2422_v21, %v1536_v39  ;;  %v1325_v55 = vrot.slane %v1324_v54, 1 }
0x1e58   : > { %v1539_v16 = vsel %vm1538_vm9, %v1374_v45, 0 }
0x1e59   : > { %v1540_v3 = vsel %vm1234_vm2, %v1539_v16, 0  ;;  %vm1326_vm4 = vcmp.lt.s32.totalorder %v1324_v54, %v1325_v55 }
0x1e5a   : > { %v1542_v4 = vshrl.u32 %v1540_v3, 16  ;;  %v1541_v52 = vand.u32 65535, %v1540_v3  ;;  %v1327_v57 = vsel %vm1326_vm4, %v1324_v54, %v1325_v55 }
0x1e5c   : > { %v1544_v1 = vcvt.s32.f32 %v1542_v4  ;;  %v1543_v13 = vcvt.s32.f32 %v1541_v52 }
0x1e5e   : > { %1547 = vadd.xlane.f32.xlu1 %v1544_v1  ;;  %1545 = vadd.xlane.f32.xlu0 %v1543_v13 }
0x1e62   : > { %1297 = vmin.xlane.f32.xlu0 %v1296_v26  ;;  %1348 = vmin.xlane.f32.xlu1 %v1347_v22 }
0x1eeb   : > { %v1548_v12 = vpop.xlane.xlu1 %1547  ;;  %v1546_v18 = vpop.xlane.xlu0 %1545 }
0x1eec   : > { %v1550_v20 = vcvt.f32.s32 %v1548_v12  ;;  %v1549_v35 = vcvt.f32.s32 %v1546_v18 }
0x1eee   : > { %v1551_v50 = vshll.u32 %v1550_v20, 16 }
0x1eef   : > { %v1349_v15 = vpop.xlane.xlu1 %1348  ;;  %v1298_v0 = vpop.xlane.xlu0 %1297 }
0x1ef0   : > { %v1552_v38 = vadd.s32 %v1551_v50, %v1549_v35  ;;  %v1350_v25 = vcvt.f32.s32 %v1349_v15  ;;  %vm1299_vm3 = vcmp.eq.f32.partialorder %v1296_v26, %v1298_v0 }
0x1ef1   : > { %v1300_v27 = vsel %vm1299_vm3, %v1295_v59, inf }
0x1ef2   : > { %1909 = vpush %v1552_v38  ;;  %v1353_v29 = vadd.s32 %v1352_v28, %v1350_v25 }
0x1f23   : > { %s1910_s27 = spop %1909 }
0x1f24   : > { %v1555_v30 = vstv %s1910_s27 }
0x1f25   : > { %v1556_v33 = vsel %vm1554_vm11, %v1555_v30, %v1537_v32  ;;  %vm1557_vm13 = vcmp.eq.s32.totalorder %v2383_v2, %v1555_v30  ;;  %v1304_v32 = vcvt.f32.s32 %v1298_v0 }
0x1f26   : > { %v1558_v34 = vsel %vm1557_vm13, %v1353_v29, 0 }
0x1f27   : > { %v1559_v36 = vsel %vm1494_vm5, %v1558_v34, 0  ;;  %v1305_v3 = vshll.u32 %v1304_v32, 16 }
0x1f28   : > { %v1560_v47 = vrot.slane %v1559_v36, 4 }
0x1f2a   : > { %v1561_v40 = vadd.s32 %v1560_v47, %v1559_v36 }
0x1f2c   : > { %v1562_v41 = vrot.slane %v1561_v40, 2 }
0x1f2e   : > { %v1563_v63 = vadd.s32 %v1562_v41, %v1561_v40 }
0x1f30   : > { %v1564_v37 = vrot.slane %v1563_v63, 1 }
0x1f32   : > { %v1565_v43 = vadd.s32 %v1564_v37, %v1563_v63 }
0x1f34   : > { %1911 = vpush %v1565_v43 }
0x1f65   : > { %s1912_s7 = spop %1911 }
0x1f66   : > { %v1568_v56 = vstv %s1912_s7 }
0x1f67   : > { %v1569_v60 = vsel %vm1567_vm15, %v1568_v56, %v1556_v33  ;;  %vm1570_vm10 = vcmp.eq.s32.totalorder %v2422_v21, %v1568_v56 }
0x1f68   : > { %v1571_v23 = vsel %vm1570_vm10, %v1327_v57, 0 }
0x1f69   : > { %v1572_v31 = vsel %vm1234_vm2, %v1571_v23, 0  ;;  %vm1586_vm2 = vcmp.eq.s32.totalorder %v2422_v21, 1 }
0x1f6a   : > { %v1574_v62 = vshrl.u32 %v1572_v31, 16  ;;  %v1573_v48 = vand.u32 65535, %v1572_v31 }
0x1f6c   : > { %v1576_v5 = vcvt.s32.f32 %v1574_v62  ;;  %v1575_v6 = vcvt.s32.f32 %v1573_v48 }
0x1f6e   : > { %1579 = vadd.xlane.f32.xlu1 %v1576_v5  ;;  %1577 = vadd.xlane.f32.xlu0 %v1575_v6 }
0x1f72   : > { %1301 = vmin.xlane.f32.xlu1 %v1300_v27 }
0x1ffb   : > { %v1580_v9 = vpop.xlane.xlu1 %1579  ;;  %v1578_v10 = vpop.xlane.xlu0 %1577 }
0x1ffc   : > { %v1582_v11 = vcvt.f32.s32 %v1580_v9  ;;  %v1581_v14 = vcvt.f32.s32 %v1578_v10 }
0x1ffe   : > { %v1583_v8 = vshll.u32 %v1582_v11, 16 }
0x1fff   : > { %v1302_v45 = vpop.xlane.xlu1 %1301 }
0x2000   : > { %v1584_v39 = vadd.s32 %v1583_v8, %v1581_v14  ;;  %v1303_v16 = vcvt.f32.s32 %v1302_v45 }
0x2002   : > { %1913 = vpush %v1584_v39  ;;  %v1306_v61 = vadd.s32 %v1305_v3, %v1303_v16 }
0x2033   : > { %s1914_s9 = spop %1913 }
0x2034   : > { %v1587_v4 = vstv %s1914_s9 }
0x2035   : > { %v1588_v52 = vsel %vm1586_vm2, %v1587_v4, %v1569_v60  ;;  %vm1589_vm8 = vcmp.eq.s32.totalorder %v2383_v2, %v1587_v4 }
0x2036   : > { %v1590_v46 = vsel %vm1589_vm8, %v1306_v61, 0 }
0x2037   : > { %v1591_v19 = vsel %vm1494_vm5, %v1590_v46, 0 }
0x2038   : > { %v1592_v1 = vrot.slane %v1591_v19, 4 }
0x203a   : > { %v1593_v13 = vadd.s32 %v1592_v1, %v1591_v19 }
0x203c   : > { %v1594_v17 = vrot.slane %v1593_v13, 2 }
0x203e   : > { %v1595_v58 = vadd.s32 %v1594_v17, %v1593_v13 }
0x2040   : > { %v1596_v26 = vrot.slane %v1595_v58, 1 }
0x2042   : > { %v1597_v22 = vadd.s32 %v1596_v26, %v1595_v58 }
0x2044   : > { %1915 = vpush %v1597_v22 }
0x2075   : > { %s1916_s15 = spop %1915 }
0x2076   : > { %v1600_v2 = vstv %s1916_s15 }
0x2077   : > { %v1601_v12 = vsel %vm1599_vm14, %v1600_v2, %v1588_v52 }
0x2078   : > { %1605 = vst.msk [vmem:[%s215_s19] sm:$0x1] %vm1604_vm1, %v1601_v12 }
0x2079   : > { %2138 = shalt.err (!%p2135_p0)
}
0x207a   : > { %s2139_s16 = scalar_lea.hbm %s2868_s21, 16  ;;  %s2143_s7 = scalar_lea.hbm %s2914_s4, 64 }
0x207b   : > { %p2140_p2 = scmp.ne.s32.totalorder %s2868_s21, %s2139_s16  ;;  %p2144_p9 = scmp.lt.u32.totalorder %s2868_s21, %s2914_s4 }
0x207c   : > { %p2145_p12 = scmp.lt.u32.totalorder %s2143_s7, %s2139_s16  ;;  %p2147_p13 = scmp.lt.u32.totalorder %s2139_s16, %s2868_s21 }
0x207d   : > { %p2141_p3 = pnand %p2140_p2, %p2930_p4 }
0x207e   : > { %p2146_p1 = por %p2145_p12, %p2144_p9 }
0x207f   : > { %p2142_p8 = pneg %p2141_p3 }
0x2080   : > { %p2148_p5 = por %p2147_p13, %p2146_p1 }
0x2082   : > { %p2149_p6 = pnand %p2148_p5, %p2142_p8 }
0x2084   : > { %2152 = shalt.err (!%p2149_p6)
}
0x2085   : > { %1925 = dma.vmem_to_hbm [thread:$0]  (%p2930_p4), %s2870_s10, 16, %s2868_s21, %s1610_s0  }
0x2086 PF: > { %p1942_p7 = scmp.ge.s32.totalorder %s2197_s6, 2  ;;  %s1650_s14 = sand.u32 1, %s2185_s28  }
0x2087   : > { %p2931_p10 = scmp.ne.s32.totalorder %s2920_s13, 0  ;;  %s1651_s19 = scalar_lea.sflag [#allocation6], %s1650_s14 }
0x2089   : > { %p1935_p11 = pnand %p1942_p7, %p2931_p10 }
0x208b   : > { %2180 = dma.done.wait (!%p1935_p11), %s1651_s19, 16  }
0x208c   : > { %2182 = vsyncadd (!%p1935_p11), %s1651_s19, 4294967280  ;;  %p22_p0 = scmp.ge.s32.totalorder %s2280_s8, 6   ;;  %s2932_s28 = smov %s2189_s29 }
0x208d   : > { %s2933_s29 = smov %s2193_s30  ;;  %s2934_s30 = smov %s2291_s11 }
0x208e   : > { %s2935_s6 = smov %s2280_s8  ;;  %24 = sbr.rel (!%p22_p0) target bundleno = 17 (0x11), region = 93 }
0x2095   :  { %1662 = vsyncpa [#allocation5], 1 }
0x2096   :  { %1664 = vsyncpa [#allocation5 + $0x1], 1 }
0x2097   :  { %1665 = vsyncpa [#allocation8], 1 }
0x2098   :  { %1666 = vsyncpa [#allocation6], 1 }
0x2099   :  { %1668 = vsyncpa [#allocation6 + $0x1], 1 }

</bundles_post_ra>
